<compile_context>
chip_gen: v5e
topology: v5e:2x2
jax: 0.10.0
libtpu: 0.0.40
codegen_flags: <defaults>
</compile_context>

<pallas_src>
import functools
import numpy as np
import jax
import jax.numpy as jnp
from jax import lax
from jax.experimental import pallas as pl
from jax.experimental.pallas import tpu as pltpu


# ----------------------------- helpers -----------------------------------------
def round_to(v, divisor=8, min_value=None):
    if min_value is None:
        min_value = divisor
    new_v = max(min_value, int(v + divisor / 2) // divisor * divisor)
    if new_v < v * 0.9:
        new_v += divisor
    return new_v


def _hardswish(x):
    return x * jnp.clip(x + 3.0, 0.0, 6.0) * (1.0 / 6.0)


def _hardsigmoid(x):
    return jnp.clip(x + 3.0, 0.0, 6.0) * (1.0 / 6.0)


def _make_dw_masks(H, W, K):
    """Per-tap validity masks for the rolled depthwise conv (zero padding)."""
    pad = K // 2
    h = np.arange(H)[:, None]
    w = np.arange(W)[None, :]
    masks = []
    for di in range(K):
        for dj in range(K):
            vh = (h + di - pad >= 0) & (h + di - pad < H)
            vw = (w + dj - pad >= 0) & (w + dj - pad < W)
            masks.append((vh & vw).astype(np.float32).reshape(-1))
    return np.stack(masks, axis=0)  # (K*K, H*W)


# ----------------------------- fused kernel -------------------------------------
def _funnelexit_kernel(x_ref, w1t_ref, wdwm_ref, se_ref, bias_ref, w3_ref, o_ref, *,
                       H, W, K, G, Cexp, Cout, use_res):
    N = H * W
    GN = G * N
    pad = K // 2

    x = x_ref[0]                                            # (Cin, G*N)

    # Packed per-channel biases: columns [b1 | bdw | sb2 | b3].
    b1 = bias_ref[:Cexp, 0:1]
    bdw = bias_ref[:Cexp, 1:2]
    sb2 = bias_ref[:Cexp, 2:3]
    b3 = bias_ref[:Cout, 3:4]
    # Packed SE weights: rows [sw1 (Cexp) | sw2^T (Cexp) | sb1 (1)].
    sw1 = se_ref[:Cexp, :]                                  # (Cexp, Csq)
    sw2t = se_ref[Cexp:2 * Cexp, :]                         # (Cexp, Csq)
    sb1 = se_ref[2 * Cexp:2 * Cexp + 1, :]                  # (1, Csq)

    # ---- 1x1 expand + folded BN + Hardswish (bf16 MXU operands, f32 accum) ----
    e = jnp.dot(w1t_ref[...].astype(jnp.bfloat16),
                x.astype(jnp.bfloat16),
                preferred_element_type=jnp.float32)         # (Cexp, G*N)
    e = _hardswish(e + b1)

    # ---- KxK depthwise (stride 1, zero pad) + folded BN + Hardswish ----
    # Each tap is a static lane roll (XLU) times a pre-masked weight (1 VALU mul).
    acc = jnp.zeros_like(e)
    for di in range(K):
        for dj in range(K):
            t = di * K + dj
            off = (di - pad) * W + (dj - pad)
            shifted = e if off == 0 else pltpu.roll(e, (-off) % GN, axis=1)
            acc = acc + shifted * wdwm_ref[t]               # (Cexp, G*N)
    d = _hardswish(acc + bdw)

    # ---- SE (per image) + 1x1 project with SE scale folded into the weights ----
    w3 = w3_ref[...]                                        # (Cexp, Cout)
    for g in range(G):
        lo, hi = g * N, (g + 1) * N
        dg = d[:, lo:hi]                                    # (Cexp, N)
        pooled = jnp.mean(dg, axis=1, keepdims=True)        # (Cexp, 1)
        s1 = jnp.sum(sw1 * pooled, axis=0, keepdims=True)   # (1, Csq)
        s1 = jnp.maximum(s1 + sb1, 0.0)
        s2 = jnp.sum(sw2t * s1, axis=1, keepdims=True)      # (Cexp, 1)
        s2 = _hardsigmoid(s2 + sb2)
        w3s = (w3 * s2).astype(jnp.bfloat16)                # (Cexp, Cout)

        # y[o, n] = sum_c w3s[c, o] * dg[c, n]  (transposed-LHS contraction on MXU)
        yg = lax.dot_general(w3s, dg.astype(jnp.bfloat16),
                             (((0,), (0,)), ((), ())),
                             preferred_element_type=jnp.float32)   # (Cout, N)
        yg = yg + b3
        if use_res:
            yg = yg + x[:, lo:hi]                           # Cin == Cout when use_res
        o_ref[0, :, lo:hi] = yg.astype(o_ref.dtype)


def funnelexit_forward(x_nchw, params, K, use_res):
    B, Cin, H, W = x_nchw.shape
    N = H * W
    Cexp = params["w1"].shape[1]
    Cout = params["w3"].shape[1]
    Csq = params["sw1"].shape[1]

    # Grid layout: 2 steps when B is even (keeps both v7x TCs busy), else 1;
    # G images folded into the lane axis per step.
    steps = 2 if (B % 2 == 0 and B >= 2) else 1
    G = B // steps
    GN = G * N

    # Channels-major, lane-dense input slabs (layout plumbing done in the wrapper).
    x2 = (x_nchw.reshape(steps, G, Cin, N)
          .transpose(0, 2, 1, 3)
          .reshape(steps, Cin, GN))

    # Expand weight (already BN-folded).
    w1t = params["w1"].T                                    # (Cexp, Cin)

    # Pre-masked depthwise weights: wdwm[t, c, l] = mask[t, l] * wdw[t, c],
    # mask tiled across the G images folded into the lane axis.
    masks = np.tile(_make_dw_masks(H, W, K), (1, G))        # (K*K, G*N)
    wdw_tc = params["wdw"].reshape(K * K, Cexp)             # (K*K, Cexp)
    wdwm = wdw_tc[:, :, None] * jnp.asarray(masks)[:, None, :]   # (K*K, Cexp, G*N)

    # Packed SE weights (+ first-FC bias as an extra row).
    se_pack = jnp.concatenate(
        [params["sw1"], params["sw2"].T, params["sb1"]], axis=0)  # (2*Cexp+1, Csq)

    # Packed per-channel bias columns [b1 | bdw | sb2 | b3].
    Crows = max(Cexp, Cout)
    bias_pack = jnp.zeros((Crows, 4), jnp.float32)
    bias_pack = bias_pack.at[:Cexp, 0].set(params["b1"].reshape(-1))
    bias_pack = bias_pack.at[:Cexp, 1].set(params["bdw"].reshape(-1))
    bias_pack = bias_pack.at[:Cexp, 2].set(params["sb2"].reshape(-1))
    bias_pack = bias_pack.at[:Cout, 3].set(params["b3"].reshape(-1))

    w3 = params["w3"]                                       # (Cexp, Cout)

    kernel = functools.partial(_funnelexit_kernel, H=H, W=W, K=K, G=G,
                               Cexp=Cexp, Cout=Cout, use_res=use_res)

    # TODO(synk): at real MobileNet feature-map sizes add a row-tile grid axis over H
    #             (with per-tile halos) so the whole-image block fits v7x's 64 MiB VMEM.
    out = pl.pallas_call(
        kernel,
        out_shape=jax.ShapeDtypeStruct((steps, Cout, GN), jnp.float32),
        grid=(steps,),
        in_specs=[
            pl.BlockSpec((1, Cin, GN), lambda b: (b, 0, 0)),
            pl.BlockSpec((Cexp, Cin), lambda b: (0, 0)),
            pl.BlockSpec((K * K, Cexp, GN), lambda b: (0, 0, 0)),
            pl.BlockSpec((2 * Cexp + 1, Csq), lambda b: (0, 0)),
            pl.BlockSpec((Crows, 4), lambda b: (0, 0)),
            pl.BlockSpec((Cexp, Cout), lambda b: (0, 0)),
        ],
        out_specs=pl.BlockSpec((1, Cout, GN), lambda b: (b, 0, 0)),
        compiler_params=pltpu.CompilerParams(dimension_semantics=("parallel",)),
    )(x2, w1t, wdwm, se_pack, bias_pack, w3)

    return (out.reshape(steps, Cout, G, N)
            .transpose(0, 2, 1, 3)
            .reshape(B, Cout, H, W))


# ----------------------------- parameter init (deterministic) -------------------
def _bn_fold_params(c, seed_offset, eps=1e-3):
    idx = jnp.arange(c, dtype=jnp.float32)
    gamma = 1.0 + 0.05 * jnp.cos(idx + seed_offset)
    beta = 0.02 * jnp.sin(idx + seed_offset)
    mean = 0.01 * jnp.sin(idx + 2.0 * seed_offset)
    var = 1.0 + 0.1 * (idx % 7.0) / 7.0
    scale = gamma / jnp.sqrt(var + eps)
    shift = beta - mean * scale
    return scale, shift


def init_params(key, Cin, Cexp, Cout, Csq, K):
    ks = jax.random.split(key, 7)
    w1 = jax.random.normal(ks[0], (Cin, Cexp), jnp.float32) / np.sqrt(Cin)
    wdw = jax.random.normal(ks[1], (K, K, Cexp), jnp.float32) / np.sqrt(K * K)
    sw1 = jax.random.normal(ks[2], (Cexp, Csq), jnp.float32) / np.sqrt(Cexp)
    sb1 = 0.01 * jax.random.normal(ks[3], (1, Csq), jnp.float32)
    sw2 = jax.random.normal(ks[4], (Csq, Cexp), jnp.float32) / np.sqrt(Csq)
    sb2 = 0.01 * jax.random.normal(ks[5], (1, Cexp), jnp.float32)
    w3 = jax.random.normal(ks[6], (Cexp, Cout), jnp.float32) / np.sqrt(Cexp)
    s1, h1 = _bn_fold_params(Cexp, 1.0)
    s2, h2 = _bn_fold_params(Cexp, 2.0)
    s3, h3 = _bn_fold_params(Cout, 3.0)
    return dict(
        w1=w1 * s1[None, :], b1=h1[None, :],
        wdw=wdw * s2[None, None, :], bdw=h2[None, :],
        sw1=sw1, sb1=sb1, sw2=sw2, sb2=sb2,
        w3=w3 * s3[None, :], b3=h3[None, :],
    )


# ----------------------------- pure-JAX reference (for verification) ------------
def funnelexit_reference(x_nchw, p, K, use_res, bf16_dots=False):
    cast = (lambda a: a.astype(jnp.bfloat16)) if bf16_dots else (lambda a: a)
    B, Cin, H, W = x_nchw.shape
    x_nhwc = jnp.transpose(x_nchw, (0, 2, 3, 1))
    e = jnp.einsum("bhwc,ce->bhwe", cast(x_nhwc), cast(p["w1"]),
                   preferred_element_type=jnp.float32)
    e = _hardswish(e + p["b1"][0])
    pad = K // 2
    ep = jnp.pad(e, ((0, 0), (pad, pad), (pad, pad), (0, 0)))
    acc = jnp.zeros_like(e)
    for di in range(K):
        for dj in range(K):
            acc = acc + ep[:, di:di + H, dj:dj + W, :] * p["wdw"][di, dj]
    d = _hardswish(acc + p["bdw"][0])
    pooled = jnp.mean(d, axis=(1, 2))
    s1 = jnp.maximum(pooled @ p["sw1"] + p["sb1"][0], 0.0)
    s2 = _hardsigmoid(s1 @ p["sw2"] + p["sb2"][0])
    w3s = p["w3"][None, :, :] * s2[:, :, None]              # SE folded into weights
    y = jnp.einsum("bhwe,beo->bhwo", cast(d), cast(w3s),
                   preferred_element_type=jnp.float32) + p["b3"][0]
    if use_res:
        y = y + x_nhwc
    return jnp.transpose(y, (0, 3, 1, 2))


# ----------------------------- main ---------------------------------------------
if __name__ == "__main__":
    # Config: input=16, kernel=3, expanded=32, out=16, use_se=True, activation='HS', stride=1
    Cin = round_to(16, 8)
    Cexp = round_to(32, 8)
    Cout = round_to(16, 8)
    K = 3
    stride = 1
    Csq = round_to(Cexp // 4, 8)
    use_res = (stride == 1 and Cin == Cout)

    H = W = 16
    key = jax.random.PRNGKey(0)
    kx, kp = jax.random.split(key)
    params = init_params(kp, Cin, Cexp, Cout, Csq, K)

    # Test both the G=1 (B=2 -> one image per grid step) and the lane-folded
    # G=2 (B=4 -> two images per grid step) paths.
    for B in (2, 4):
        x = jax.random.normal(jax.random.fold_in(kx, B), (B, Cin, H, W), jnp.float32)
        y = jax.block_until_ready(funnelexit_forward(x, params, K, use_res))
        assert y.shape == (B, Cout, H, W)

        # Tight check vs a reference that mirrors the bf16 MXU-operand casts.
        y_ref_bf = funnelexit_reference(x, params, K, use_res, bf16_dots=True)
        err_bf = float(jnp.max(jnp.abs(y - y_ref_bf)))
        assert err_bf < 2e-3, f"B={B}: bf16-ref max abs error {err_bf}"

        # Looser check vs the full-f32 reference (bf16 operand rounding only).
        y_ref_32 = funnelexit_reference(x, params, K, use_res, bf16_dots=False)
        err_32 = float(jnp.max(jnp.abs(y - y_ref_32)))
        assert err_32 < 6e-2, f"B={B}: f32-ref max abs error {err_32}"

    print("KERNEL_OK")
</pallas_src>

<mosaic_0001>
module attributes {stable_mosaic.version = 11 : i64} {
  func.func @_funnelexit_kernel(%arg0: i32, %arg1: memref<1x16x256xf32, #tpu.memory_space<vmem>>, %arg2: memref<32x16xf32, #tpu.memory_space<vmem>>, %arg3: memref<9x32x256xf32, #tpu.memory_space<vmem>>, %arg4: memref<65x8xf32, #tpu.memory_space<vmem>>, %arg5: memref<32x4xf32, #tpu.memory_space<vmem>>, %arg6: memref<32x16xf32, #tpu.memory_space<vmem>>, %arg7: memref<1x16x256xf32, #tpu.memory_space<vmem>>) attributes {dimension_semantics = [#tpu.dimension_semantics<parallel>], iteration_bounds = array<i64: 2>, scalar_prefetch = 0 : i64, scratch_operands = 0 : i64, tpu.core_type = #tpu.core_type<tc>, window_params = [{transform_indices = @transform_0, window_bounds = array<i64: 1, 16, 256>}, {pipeline_mode = #tpu.pipeline_mode<synchronous>, transform_indices = @transform_1, window_bounds = array<i64: 32, 16>}, {pipeline_mode = #tpu.pipeline_mode<synchronous>, transform_indices = @transform_2, window_bounds = array<i64: 9, 32, 256>}, {pipeline_mode = #tpu.pipeline_mode<synchronous>, transform_indices = @transform_3, window_bounds = array<i64: 65, 8>}, {pipeline_mode = #tpu.pipeline_mode<synchronous>, transform_indices = @transform_4, window_bounds = array<i64: 32, 4>}, {pipeline_mode = #tpu.pipeline_mode<synchronous>, transform_indices = @transform_5, window_bounds = array<i64: 32, 16>}, {transform_indices = @transform_6, window_bounds = array<i64: 1, 16, 256>}]} {
    %c0 = arith.constant 0 : index
    %c0_0 = arith.constant 0 : index
    %c0_1 = arith.constant 0 : index
    %0 = vector.load %arg1[%c0, %c0_0, %c0_1] : memref<1x16x256xf32, #tpu.memory_space<vmem>>, vector<1x16x256xf32>
    %1 = vector.shape_cast %0 : vector<1x16x256xf32> to vector<16x256xf32>
    %c0_2 = arith.constant 0 : index
    %c0_3 = arith.constant 0 : index
    %2 = vector.load %arg5[%c0_2, %c0_3] : memref<32x4xf32, #tpu.memory_space<vmem>>, vector<32x1xf32>
    %c0_4 = arith.constant 0 : index
    %c1 = arith.constant 1 : index
    %3 = vector.load %arg5[%c0_4, %c1] : memref<32x4xf32, #tpu.memory_space<vmem>>, vector<32x1xf32>
    %c0_5 = arith.constant 0 : index
    %c2 = arith.constant 2 : index
    %4 = vector.load %arg5[%c0_5, %c2] : memref<32x4xf32, #tpu.memory_space<vmem>>, vector<32x1xf32>
    %c0_6 = arith.constant 0 : index
    %c3 = arith.constant 3 : index
    %5 = vector.load %arg5[%c0_6, %c3] : memref<32x4xf32, #tpu.memory_space<vmem>>, vector<16x1xf32>
    %c0_7 = arith.constant 0 : index
    %c0_8 = arith.constant 0 : index
    %6 = vector.load %arg4[%c0_7, %c0_8] : memref<65x8xf32, #tpu.memory_space<vmem>>, vector<32x8xf32>
    %c32 = arith.constant 32 : index
    %c0_9 = arith.constant 0 : index
    %7 = vector.load %arg4[%c32, %c0_9] : memref<65x8xf32, #tpu.memory_space<vmem>>, vector<32x8xf32>
    %c64 = arith.constant 64 : index
    %c0_10 = arith.constant 0 : index
    %8 = vector.load %arg4[%c64, %c0_10] : memref<65x8xf32, #tpu.memory_space<vmem>>, vector<1x8xf32>
    %c0_11 = arith.constant 0 : index
    %c0_12 = arith.constant 0 : index
    %9 = vector.load %arg2[%c0_11, %c0_12] : memref<32x16xf32, #tpu.memory_space<vmem>>, vector<32x16xf32>
    %10 = arith.truncf %9 : vector<32x16xf32> to vector<32x16xbf16>
    %11 = arith.truncf %1 : vector<16x256xf32> to vector<16x256xbf16>
    %cst = arith.constant dense<0.000000e+00> : vector<32x256xf32>
    %12 = tpu.matmul %10, %11, %cst {dimension_numbers = #tpu.dot_dimension_numbers<[1], [0], [0], [1], [0, 0, 1, 1], [], []>} : vector<32x16xbf16>, vector<16x256xbf16>, vector<32x256xf32> -> vector<32x256xf32>
    %13 = vector.broadcast %2 : vector<32x1xf32> to vector<32x256xf32>
    %14 = arith.addf %12, %13 : vector<32x256xf32>
    %cst_13 = arith.constant 3.000000e+00 : f32
    %15 = vector.broadcast %cst_13 : f32 to vector<32x256xf32>
    %16 = arith.addf %14, %15 : vector<32x256xf32>
    %cst_14 = arith.constant 0.000000e+00 : f32
    %cst_15 = arith.constant 6.000000e+00 : f32
    %17 = vector.broadcast %cst_14 : f32 to vector<32x256xf32>
    %18 = arith.maximumf %17, %16 : vector<32x256xf32>
    %19 = vector.broadcast %cst_15 : f32 to vector<32x256xf32>
    %20 = arith.minimumf %19, %18 : vector<32x256xf32>
    %21 = arith.mulf %14, %20 : vector<32x256xf32>
    %cst_16 = arith.constant 0.166666672 : f32
    %22 = vector.broadcast %cst_16 : f32 to vector<32x256xf32>
    %23 = arith.mulf %21, %22 : vector<32x256xf32>
    %cst_17 = arith.constant 0.000000e+00 : f32
    %24 = vector.broadcast %cst_17 : f32 to vector<32x256xf32>
    %c17_i32 = arith.constant 17 : i32
    %25 = tpu.dynamic_rotate %23 by %c17_i32 dim 1 : vector<32x256xf32>, i32 -> vector<32x256xf32>
    %c0_18 = arith.constant 0 : index
    %c0_19 = arith.constant 0 : index
    %c0_20 = arith.constant 0 : index
    %26 = vector.load %arg3[%c0_18, %c0_19, %c0_20] : memref<9x32x256xf32, #tpu.memory_space<vmem>>, vector<1x32x256xf32>
    %27 = vector.shape_cast %26 : vector<1x32x256xf32> to vector<32x256xf32>
    %28 = arith.mulf %25, %27 : vector<32x256xf32>
    %29 = arith.addf %24, %28 : vector<32x256xf32>
    %c16_i32 = arith.constant 16 : i32
    %30 = tpu.dynamic_rotate %23 by %c16_i32 dim 1 : vector<32x256xf32>, i32 -> vector<32x256xf32>
    %c1_21 = arith.constant 1 : index
    %c0_22 = arith.constant 0 : index
    %c0_23 = arith.constant 0 : index
    %31 = vector.load %arg3[%c1_21, %c0_22, %c0_23] : memref<9x32x256xf32, #tpu.memory_space<vmem>>, vector<1x32x256xf32>
    %32 = vector.shape_cast %31 : vector<1x32x256xf32> to vector<32x256xf32>
    %33 = arith.mulf %30, %32 : vector<32x256xf32>
    %34 = arith.addf %29, %33 : vector<32x256xf32>
    %c15_i32 = arith.constant 15 : i32
    %35 = tpu.dynamic_rotate %23 by %c15_i32 dim 1 : vector<32x256xf32>, i32 -> vector<32x256xf32>
    %c2_24 = arith.constant 2 : index
    %c0_25 = arith.constant 0 : index
    %c0_26 = arith.constant 0 : index
    %36 = vector.load %arg3[%c2_24, %c0_25, %c0_26] : memref<9x32x256xf32, #tpu.memory_space<vmem>>, vector<1x32x256xf32>
    %37 = vector.shape_cast %36 : vector<1x32x256xf32> to vector<32x256xf32>
    %38 = arith.mulf %35, %37 : vector<32x256xf32>
    %39 = arith.addf %34, %38 : vector<32x256xf32>
    %c1_i32 = arith.constant 1 : i32
    %40 = tpu.dynamic_rotate %23 by %c1_i32 dim 1 : vector<32x256xf32>, i32 -> vector<32x256xf32>
    %c3_27 = arith.constant 3 : index
    %c0_28 = arith.constant 0 : index
    %c0_29 = arith.constant 0 : index
    %41 = vector.load %arg3[%c3_27, %c0_28, %c0_29] : memref<9x32x256xf32, #tpu.memory_space<vmem>>, vector<1x32x256xf32>
    %42 = vector.shape_cast %41 : vector<1x32x256xf32> to vector<32x256xf32>
    %43 = arith.mulf %40, %42 : vector<32x256xf32>
    %44 = arith.addf %39, %43 : vector<32x256xf32>
    %c4 = arith.constant 4 : index
    %c0_30 = arith.constant 0 : index
    %c0_31 = arith.constant 0 : index
    %45 = vector.load %arg3[%c4, %c0_30, %c0_31] : memref<9x32x256xf32, #tpu.memory_space<vmem>>, vector<1x32x256xf32>
    %46 = vector.shape_cast %45 : vector<1x32x256xf32> to vector<32x256xf32>
    %47 = arith.mulf %23, %46 : vector<32x256xf32>
    %48 = arith.addf %44, %47 : vector<32x256xf32>
    %c255_i32 = arith.constant 255 : i32
    %49 = tpu.dynamic_rotate %23 by %c255_i32 dim 1 : vector<32x256xf32>, i32 -> vector<32x256xf32>
    %c5 = arith.constant 5 : index
    %c0_32 = arith.constant 0 : index
    %c0_33 = arith.constant 0 : index
    %50 = vector.load %arg3[%c5, %c0_32, %c0_33] : memref<9x32x256xf32, #tpu.memory_space<vmem>>, vector<1x32x256xf32>
    %51 = vector.shape_cast %50 : vector<1x32x256xf32> to vector<32x256xf32>
    %52 = arith.mulf %49, %51 : vector<32x256xf32>
    %53 = arith.addf %48, %52 : vector<32x256xf32>
    %c241_i32 = arith.constant 241 : i32
    %54 = tpu.dynamic_rotate %23 by %c241_i32 dim 1 : vector<32x256xf32>, i32 -> vector<32x256xf32>
    %c6 = arith.constant 6 : index
    %c0_34 = arith.constant 0 : index
    %c0_35 = arith.constant 0 : index
    %55 = vector.load %arg3[%c6, %c0_34, %c0_35] : memref<9x32x256xf32, #tpu.memory_space<vmem>>, vector<1x32x256xf32>
    %56 = vector.shape_cast %55 : vector<1x32x256xf32> to vector<32x256xf32>
    %57 = arith.mulf %54, %56 : vector<32x256xf32>
    %58 = arith.addf %53, %57 : vector<32x256xf32>
    %c240_i32 = arith.constant 240 : i32
    %59 = tpu.dynamic_rotate %23 by %c240_i32 dim 1 : vector<32x256xf32>, i32 -> vector<32x256xf32>
    %c7 = arith.constant 7 : index
    %c0_36 = arith.constant 0 : index
    %c0_37 = arith.constant 0 : index
    %60 = vector.load %arg3[%c7, %c0_36, %c0_37] : memref<9x32x256xf32, #tpu.memory_space<vmem>>, vector<1x32x256xf32>
    %61 = vector.shape_cast %60 : vector<1x32x256xf32> to vector<32x256xf32>
    %62 = arith.mulf %59, %61 : vector<32x256xf32>
    %63 = arith.addf %58, %62 : vector<32x256xf32>
    %c239_i32 = arith.constant 239 : i32
    %64 = tpu.dynamic_rotate %23 by %c239_i32 dim 1 : vector<32x256xf32>, i32 -> vector<32x256xf32>
    %c8 = arith.constant 8 : index
    %c0_38 = arith.constant 0 : index
    %c0_39 = arith.constant 0 : index
    %65 = vector.load %arg3[%c8, %c0_38, %c0_39] : memref<9x32x256xf32, #tpu.memory_space<vmem>>, vector<1x32x256xf32>
    %66 = vector.shape_cast %65 : vector<1x32x256xf32> to vector<32x256xf32>
    %67 = arith.mulf %64, %66 : vector<32x256xf32>
    %68 = arith.addf %63, %67 : vector<32x256xf32>
    %69 = vector.broadcast %3 : vector<32x1xf32> to vector<32x256xf32>
    %70 = arith.addf %68, %69 : vector<32x256xf32>
    %cst_40 = arith.constant 3.000000e+00 : f32
    %71 = vector.broadcast %cst_40 : f32 to vector<32x256xf32>
    %72 = arith.addf %70, %71 : vector<32x256xf32>
    %cst_41 = arith.constant 0.000000e+00 : f32
    %cst_42 = arith.constant 6.000000e+00 : f32
    %73 = vector.broadcast %cst_41 : f32 to vector<32x256xf32>
    %74 = arith.maximumf %73, %72 : vector<32x256xf32>
    %75 = vector.broadcast %cst_42 : f32 to vector<32x256xf32>
    %76 = arith.minimumf %75, %74 : vector<32x256xf32>
    %77 = arith.mulf %70, %76 : vector<32x256xf32>
    %cst_43 = arith.constant 0.166666672 : f32
    %78 = vector.broadcast %cst_43 : f32 to vector<32x256xf32>
    %79 = arith.mulf %77, %78 : vector<32x256xf32>
    %c0_44 = arith.constant 0 : index
    %c0_45 = arith.constant 0 : index
    %80 = vector.load %arg6[%c0_44, %c0_45] : memref<32x16xf32, #tpu.memory_space<vmem>>, vector<32x16xf32>
    %cst_46 = arith.constant dense<0.000000e+00> : vector<32xf32>
    %81 = vector.multi_reduction <add>, %79, %cst_46 [1] : vector<32x256xf32> to vector<32xf32>
    %82 = vector.shape_cast %81 : vector<32xf32> to vector<32x1xf32>
    %cst_47 = arith.constant 2.560000e+02 : f32
    %83 = vector.broadcast %cst_47 : f32 to vector<32x1xf32>
    %84 = arith.divf %82, %83 : vector<32x1xf32>
    %85 = vector.broadcast %84 : vector<32x1xf32> to vector<32x8xf32>
    %86 = arith.mulf %6, %85 : vector<32x8xf32>
    %cst_48 = arith.constant dense<0.000000e+00> : vector<8xf32>
    %87 = vector.multi_reduction <add>, %86, %cst_48 [0] : vector<32x8xf32> to vector<8xf32>
    %88 = vector.shape_cast %87 : vector<8xf32> to vector<1x8xf32>
    %89 = arith.addf %88, %8 : vector<1x8xf32>
    %cst_49 = arith.constant 0.000000e+00 : f32
    %90 = vector.broadcast %cst_49 : f32 to vector<1x8xf32>
    %91 = arith.maximumf %89, %90 : vector<1x8xf32>
    %92 = vector.broadcast %91 : vector<1x8xf32> to vector<32x8xf32>
    %93 = arith.mulf %7, %92 : vector<32x8xf32>
    %cst_50 = arith.constant dense<0.000000e+00> : vector<32xf32>
    %94 = vector.multi_reduction <add>, %93, %cst_50 [1] : vector<32x8xf32> to vector<32xf32>
    %95 = vector.shape_cast %94 : vector<32xf32> to vector<32x1xf32>
    %96 = arith.addf %95, %4 : vector<32x1xf32>
    %cst_51 = arith.constant 3.000000e+00 : f32
    %97 = vector.broadcast %cst_51 : f32 to vector<32x1xf32>
    %98 = arith.addf %96, %97 : vector<32x1xf32>
    %cst_52 = arith.constant 0.000000e+00 : f32
    %cst_53 = arith.constant 6.000000e+00 : f32
    %99 = vector.broadcast %cst_52 : f32 to vector<32x1xf32>
    %100 = arith.maximumf %99, %98 : vector<32x1xf32>
    %101 = vector.broadcast %cst_53 : f32 to vector<32x1xf32>
    %102 = arith.minimumf %101, %100 : vector<32x1xf32>
    %cst_54 = arith.constant 0.166666672 : f32
    %103 = vector.broadcast %cst_54 : f32 to vector<32x1xf32>
    %104 = arith.mulf %102, %103 : vector<32x1xf32>
    %105 = vector.broadcast %104 : vector<32x1xf32> to vector<32x16xf32>
    %106 = arith.mulf %80, %105 : vector<32x16xf32>
    %107 = arith.truncf %106 : vector<32x16xf32> to vector<32x16xbf16>
    %108 = arith.truncf %79 : vector<32x256xf32> to vector<32x256xbf16>
    %cst_55 = arith.constant dense<0.000000e+00> : vector<16x256xf32>
    %109 = tpu.matmul %107, %108, %cst_55 {dimension_numbers = #tpu.dot_dimension_numbers<[0], [0], [1], [1], [0, 1, 1, 1], [], []>} : vector<32x16xbf16>, vector<32x256xbf16>, vector<16x256xf32> -> vector<16x256xf32>
    %110 = vector.broadcast %5 : vector<16x1xf32> to vector<16x256xf32>
    %111 = arith.addf %109, %110 : vector<16x256xf32>
    %112 = arith.addf %111, %1 : vector<16x256xf32>
    %c0_56 = arith.constant 0 : index
    %c0_57 = arith.constant 0 : index
    %c0_58 = arith.constant 0 : index
    %113 = vector.load %arg7[%c0_56, %c0_57, %c0_58] : memref<1x16x256xf32, #tpu.memory_space<vmem>>, vector<1x16x256xf32>
    %114 = vector.shape_cast %113 : vector<1x16x256xf32> to vector<16x256xf32>
    %115 = vector.shape_cast %112 : vector<16x256xf32> to vector<1x16x256xf32>
    tpu.vector_store %arg7[%c0_56, %c0_57, %c0_58], %115 {strides = array<i32>} : memref<1x16x256xf32, #tpu.memory_space<vmem>>, vector<1x16x256xf32>,
    return
  }
  func.func @transform_0(%arg0: i32) -> (i32, i32, i32) {
    %c0_i32 = arith.constant 0 : i32
    %c0_i32_0 = arith.constant 0 : i32
    %c0_i32_1 = arith.constant 0 : i32
    return %arg0, %c0_i32, %c0_i32_0 : i32, i32, i32
  }
  func.func @transform_1(%arg0: i32) -> (i32, i32) {
    %c0_i32 = arith.constant 0 : i32
    %c0_i32_0 = arith.constant 0 : i32
    %c0_i32_1 = arith.constant 0 : i32
    return %c0_i32, %c0_i32_0 : i32, i32
  }
  func.func @transform_2(%arg0: i32) -> (i32, i32, i32) {
    %c0_i32 = arith.constant 0 : i32
    %c0_i32_0 = arith.constant 0 : i32
    %c0_i32_1 = arith.constant 0 : i32
    %c0_i32_2 = arith.constant 0 : i32
    return %c0_i32, %c0_i32_0, %c0_i32_1 : i32, i32, i32
  }
  func.func @transform_3(%arg0: i32) -> (i32, i32) {
    %c0_i32 = arith.constant 0 : i32
    %c0_i32_0 = arith.constant 0 : i32
    %c0_i32_1 = arith.constant 0 : i32
    return %c0_i32, %c0_i32_0 : i32, i32
  }
  func.func @transform_4(%arg0: i32) -> (i32, i32) {
    %c0_i32 = arith.constant 0 : i32
    %c0_i32_0 = arith.constant 0 : i32
    %c0_i32_1 = arith.constant 0 : i32
    return %c0_i32, %c0_i32_0 : i32, i32
  }
  func.func @transform_5(%arg0: i32) -> (i32, i32) {
    %c0_i32 = arith.constant 0 : i32
    %c0_i32_0 = arith.constant 0 : i32
    %c0_i32_1 = arith.constant 0 : i32
    return %c0_i32, %c0_i32_0 : i32, i32
  }
  func.func @transform_6(%arg0: i32) -> (i32, i32, i32) {
    %c0_i32 = arith.constant 0 : i32
    %c0_i32_0 = arith.constant 0 : i32
    %c0_i32_1 = arith.constant 0 : i32
    return %arg0, %c0_i32, %c0_i32_0 : i32, i32, i32
  }
}

</mosaic_0001>

<bundles_post_ra>
// kernel: tpu_custom_call.1
= control target key start
LH: loop header
LB: loop body
LE: loop exit
PB: predicated region body
PF: predicated region fallthrough
CT: control target
= control target key end

     0   :  { %11 = vsyncpa [#allocation3], 0  ;;  %s1943_s0 = inlined_call_operand.vmem [shape: f32[2,16,256], index: 0, kind: input, shape index: {}]   ;;  %s1944_s1 = inlined_call_operand.vmem [shape: f32[32,16], index: 1, kind: input, shape index: {}]   ;;  %s1945_s2 = inlined_call_operand.hbm [shape: f32[9,32,256], index: 2, kind: input, shape index: {}]   ;;  %s1946_s3 = inlined_call_operand.vmem [shape: f32[65,8], index: 3, kind: input, shape index: {}]   ;;  %s1947_s4 = inlined_call_operand.vmem [shape: f32[32,4], index: 4, kind: input, shape index: {}]   ;;  %s1948_s5 = inlined_call_operand.vmem [shape: f32[32,16], index: 5, kind: input, shape index: {}]   ;;  %s1949_s6 = inlined_call_operand.hbm [shape: f32[2,16,256], index: 6, kind: output, shape index: {}]  }
   0x1   :  { %12 = vsyncpa [#allocation4], 0 }
   0x2   :  { %14 = vsyncpa [#allocation4 + $0x1], 0  ;;  %s1414_s21 = smov 0   ;;  %s1416_s22 = smov 0  }
   0x3   :  { %s1418_s23 = smov 0   ;;  %s1420_s24 = smov 0  }
   0x4 LB: > { %s1435_s25 = sadd.s32 4294967295, %s1360_s24   ;;  %s1156_s26 = sadd.s32 4294967294, %s1360_s24   ;;  %s1360_s24 = sphi %s1420_s24, %s1955_s24   ;;  %s1356_s23 = sphi %s1418_s23, %s1954_s23   ;;  %s1352_s22 = sphi %s1416_s22, %s1953_s22   ;;  %s1348_s21 = sphi %s1414_s21, %s1952_s21  }
   0x5   : > { %s1439_s27 = sadd.s32 1, %s1360_s24   ;;  %s158_s28 = sadd.s32 1, %s1356_s23 }
   0x6   : > { %s155_s29 = ssub.s32 %s1360_s24, %s1439_s27  ;;  %p168_p0 = scmp.ne.s32.totalorder %s1356_s23, %s1352_s22 }
   0x7   : > { %p156_p1 = scmp.eq.s32.totalorder %s155_s29, 0  ;;  %p169_p2 = scmp.eq.s32.totalorder %s1435_s25, 1 }
   0x8   : > { %p174_p3 = scmp.ne.s32.totalorder %s1352_s22, %s1348_s21  ;;  %p175_p4 = scmp.eq.s32.totalorder %s1156_s26, 1 }
   0x9   : > { %s1450_s30 = scalar_select %p156_p1, %s1356_s23, %s158_s28  }
   0xa   : > { %p1452_p5 = por %p169_p2, %p168_p0  ;;  %p1456_p6 = por %p175_p4, %p174_p3 }
   0xb   : > { %p1157_p7 = scmp.ge.s32.totalorder %s1360_s24, 1  ;;  %p182_p8 = scmp.lt.s32.totalorder %s1360_s24, 3 }
   0xc   : > { %p1192_p9 = scmp.eq.s32.totalorder %s1435_s25, 0  ;;  %s196_s11 = sshll.u32 %s1945_s2, 4  ;;  %s197_s11 = int_to_ptr.hbm [resolvable:$true] %s196_s11 }
   0xd   : > { %p183_p10 = pnand %p1157_p7, %p182_p8  ;;  %s1362_s12 = smov [#allocation2]  }
   0xe   : > { %s198_s13 = sshll.u32 %s1362_s12, 4  ;;  %s1363_s14 = smov 256   ;;  %s199_s13 = int_to_ptr.vmem [resolvable:$true] %s198_s13 }
   0xf   : > { %p1184_p11 = pneg %p183_p10  ;;  %s1364_s15 = smov 16  }
  0x10   : > { %231 = sbr.rel (%p183_p10) target bundleno = 1189 (0x4a5), region = 44 }
  0x11   : > { %p1185_p12 = pnand %p1192_p9, %p1184_p11 }
  0x13   : > { %1187 = dma.hbm_to_vmem [thread:$0]  (!%p1185_p12), %s197_s11, 9216, %s199_s13, [#allocation3], %s1363_s14, %s1363_s14, %s1364_s15  }
  0x15   : > { %1339 = dma.done.wait (%p1192_p9), [#allocation3], 9216  }
  0x16   : > { %1341 = vsyncadd (%p1192_p9), [#allocation3], 4294958080  ;;  %p262_p13 = scmp.lt.s32.totalorder %s1435_s25, 1  ;;  %v1365_v0 = vmov 0   ;;  %v285_v6 = vld [vmem:[%s1944_s1] sm:$0xff]  ;;  %v286_v7 = vld [vmem:[%s1944_s1 + $0x8] sm:$0xff] }
  0x17   : > { %1244 = vset.pattern.permute.xlu0 %v1365_v0  ;;  %1245 = vset.pattern.permute.xlu1 %v1365_v0  ;;  %v289_v9 = vpack.c.bf16 %v286_v7, %v285_v6  ;;  %v1492_v10 = vld [vmem:[%s1947_s4] sm:$0xff]  ;;  %vm313_vm0 = vcmask 130048   ;;  %v1498_v11 = vld [vmem:[%s1947_s4 + $0x10] sm:$0xff]  ;;  %v1504_v12 = vld [vmem:[%s1947_s4 + $0x8] sm:$0xff]  ;;  %s1366_s29 = smov 17   ;;  %s1367_s9 = smov 16  }
  0x18   : > { %s263_s16 = scalar_select %p262_p13, %s1435_s25, 1  ;;  %295 = vperm.xlu0 %1244, %v1492_v10   ;;  %305 = vperm.xlu1 %1245, %v1498_v11   ;;  %v1509_v13 = vld [vmem:[%s1947_s4 + $0x18] sm:$0xff]  ;;  %v287_v14 = vld [vmem:[%s1944_s1 + $0x10] sm:$0xff]  ;;  %vm919_vm10 = vcmask 64512   ;;  %vm1026_vm11 = vcmask 261120  }
  0x19   : > { %v288_v15 = vld [vmem:[%s1944_s1 + $0x18] sm:$0xff]  ;;  %s1368_s10 = smov 15   ;;  %s1369_s11 = smov 1  }
  0x1a   : > { %s1176_s17 = sshll.u32 %s263_s16, 5  ;;  %v290_v16 = vpack.c.bf16 %v288_v15, %v287_v14  ;;  %s1370_s12 = smov 127  }
  0x1b   : > { %s1477_s20 = scalar_lea.vmem %s1943_s0, %s1176_s17  ;;  %s1371_s13 = smov 113  }
  0x1c   : > { %v268_v1 = vld [vmem:[%s1477_s20] sm:$0xff]  ;;  %v270_v2 = vld [vmem:[%s1477_s20 + $0x10] sm:$0xff]  ;;  %v269_v3 = vld [vmem:[%s1477_s20 + $0x8] sm:$0xff]  ;;  %s1372_s14 = smov 112   ;;  %s1373_s15 = smov 111  }
  0x1d   : > { %v291_v4 = vpack.c.bf16 %v270_v2, %v268_v1  ;;  %v271_v5 = vld [vmem:[%s1477_s20 + $0x18] sm:$0xff] }
  0x1e   : > { %v292_v8 = vpack.c.bf16 %v271_v5, %v269_v3  ;;  %v414_v5 = vlaneseq }
  0x1f   : > { %327 = vmatpush.bf16.msra.mxu0 %v291_v4 }
  0x20   : > { %346 = vmatpush.bf16.msra.mxu1 %v292_v8  ;;  %300 = vperm.xlu0 %1244, %v1504_v12  }
  0x21   : > { %310 = vperm.xlu1 %1245, %v1509_v13  }
  0x22   : > { %1165 = vmatmul.msk.bf16.vlgmr.msra.gmra.mxu0 %vm313_vm0, %v289_v9 }
  0x23   : > { %1167 = vmatmul.msk.bf16.vlgmr.msra.gmra.mxu1 %vm313_vm0, %v289_v9  ;;  %v1617_v9 = vand.u32 127, %v414_v5 }
  0x25   : > { %vm465_vm1 = vcmp.lt.s32.totalorder %v1617_v9, 16  ;;  %vm416_vm2 = vcmp.lt.s32.totalorder %v1617_v9, 17  ;;  %vm515_vm3 = vcmp.lt.s32.totalorder %v1617_v9, 15  ;;  %vm640_vm4 = vcmp.lt.s32.totalorder %v1617_v9, 127 }
  0x26   : > { %vm565_vm5 = vcmp.lt.s32.totalorder %v1617_v9, 1  ;;  %vm690_vm6 = vcmp.lt.s32.totalorder %v1617_v9, 113  ;;  %vm740_vm7 = vcmp.lt.s32.totalorder %v1617_v9, 112  ;;  %vm790_vm8 = vcmp.lt.s32.totalorder %v1617_v9, 111 }
  0x32   : > { %1166 = vmatmul.msk.bf16.gmra.mxu0 %vm313_vm0, %v290_v16 }
  0x33   : > { %1168 = vmatmul.msk.bf16.gmra.mxu1 %vm313_vm0, %v290_v16  ;;  %v475_v16 = vld [vmem:[#allocation2 + $0x40] sm:$0xff] }
  0x8a   : > { %v296_v17 = vpop.permute.xlu0 %295  ;;  %v306_v47 = vpop.permute.xlu1 %305 }
  0x92   : > { %v301_v34 = vpop.permute.xlu0 %300 }
  0x93   : > { %v311_v63 = vpop.permute.xlu1 %310 }
  0x9f   : > { %v329_v18 = vpop.f32.mrf.mxu0 }
  0xa0   : > { %v330_v19 = vadd.f32 %v329_v18, %v296_v17  ;;  %v348_v20 = vpop.f32.mrf.mxu1  ;;  %v425_v18 = vld [vmem:[#allocation2] sm:$0xff] }
  0xa1   : > { %v349_v21 = vadd.f32 %v348_v20, %v296_v17  ;;  %v476_v17 = vld [vmem:[#allocation2 + $0x48] sm:$0xff] }
  0xa2   : > { %v358_v22 = vadd.f32 3.0, %v330_v19 }
  0xa3   : > { %v359_v23 = vadd.f32 3.0, %v349_v21 }
  0xa4   : > { %v366_v24 = vmax.f32 %v358_v22, 0.0 }
  0xa5   : > { %v367_v25 = vmax.f32 %v359_v23, 0.0 }
  0xa6   : > { %v374_v26 = vmin.f32 %v366_v24, 6.0 }
  0xa7   : > { %v375_v27 = vmin.f32 %v367_v25, 6.0  ;;  %v331_v32 = vpop.f32.mrf.mxu0 }
  0xa8   : > { %v382_v28 = vmul.f32 %v374_v26, %v330_v19  ;;  %v350_v33 = vpop.f32.mrf.mxu1  ;;  %v332_v35 = vadd.f32 %v331_v32, %v301_v34  ;;  %v426_v19 = vld [vmem:[#allocation2 + $0x8] sm:$0xff] }
  0xa9   : > { %v383_v29 = vmul.f32 %v375_v27, %v349_v21  ;;  %v351_v36 = vadd.f32 %v350_v33, %v301_v34 }
  0xaa   : > { %v1519_v30 = vmul.f32 0.16666667, %v382_v28  ;;  %v360_v37 = vadd.f32 3.0, %v332_v35 }
  0xab   : > { %v1521_v31 = vmul.f32 0.16666667, %v383_v29  ;;  %v361_v38 = vadd.f32 3.0, %v351_v36 }
  0xac   : > { %398 = vrot.lane.b32.xlu2 %v1519_v30, %s1366_s29  ;;  %v368_v39 = vmax.f32 %v360_v37, 0.0 }
  0xad   : > { %457 = vrot.lane.b32.xlu1 %v1521_v31, %s1367_s9  ;;  %406 = vrot.lane.b32.xlu0 %v1521_v31, %s1366_s29  ;;  %v369_v40 = vmax.f32 %v361_v38, 0.0 }
  0xae   : > { %v376_v41 = vmin.f32 %v368_v39, 6.0  ;;  %v525_v39 = vld [vmem:[#allocation2 + $0x80] sm:$0xff] }
  0xaf   : > { %v377_v42 = vmin.f32 %v369_v40, 6.0  ;;  %v334_v48 = vpop.f32.mrf.mxu0  ;;  %v526_v40 = vld [vmem:[#allocation2 + $0x88] sm:$0xff] }
  0xb0   : > { %v384_v43 = vmul.f32 %v376_v41, %v332_v35  ;;  %v353_v49 = vpop.f32.mrf.mxu1  ;;  %v335_v50 = vadd.f32 %v334_v48, %v306_v47 }
  0xb1   : > { %v385_v44 = vmul.f32 %v377_v42, %v351_v36  ;;  %v354_v51 = vadd.f32 %v353_v49, %v306_v47 }
  0xb2   : > { %v1553_v45 = vmul.f32 0.16666667, %v384_v43  ;;  %v362_v52 = vadd.f32 3.0, %v335_v50 }
  0xb3   : > { %v1555_v46 = vmul.f32 0.16666667, %v385_v44  ;;  %v363_v53 = vadd.f32 3.0, %v354_v51 }
  0xb4   : > { %449 = vrot.lane.b32.xlu2 %v1519_v30, %s1367_s9  ;;  %v370_v54 = vmax.f32 %v362_v52, 0.0 }
  0xb5   : > { %507 = vrot.lane.b32.xlu0 %v1521_v31, %s1368_s10  ;;  %499 = vrot.lane.b32.xlu1 %v1519_v30, %s1368_s10  ;;  %v371_v55 = vmax.f32 %v363_v53, 0.0 }
  0xb6   : > { %v378_v56 = vmin.f32 %v370_v54, 6.0  ;;  %v575_v54 = vld [vmem:[#allocation2 + $0xc0] sm:$0xff] }
  0xb7   : > { %v379_v57 = vmin.f32 %v371_v55, 6.0  ;;  %v336_v0 = vpop.f32.mrf.mxu0  ;;  %v576_v55 = vld [vmem:[#allocation2 + $0xc8] sm:$0xff] }
  0xb8   : > { %v386_v58 = vmul.f32 %v378_v56, %v335_v50  ;;  %v337_v2 = vadd.f32 %v336_v0, %v311_v63  ;;  %v355_v4 = vpop.f32.mrf.mxu1  ;;  %v601_v0 = vld [vmem:[#allocation2 + $0x108] sm:$0xff] }
  0xb9   : > { %v387_v59 = vmul.f32 %v379_v57, %v354_v51  ;;  %v356_v8 = vadd.f32 %v355_v4, %v311_v63 }
  0xba   : > { %v1587_v60 = vmul.f32 0.16666667, %v386_v58  ;;  %v364_v3 = vadd.f32 3.0, %v337_v2  ;;  %v600_v58 = vld [vmem:[#allocation2 + $0x100] sm:$0xff] }
  0xbb   : > { %v1589_v61 = vmul.f32 0.16666667, %v387_v59  ;;  %v365_v15 = vadd.f32 3.0, %v356_v8 }
  0xbc   : > { %549 = vrot.lane.b32.xlu2 %v1519_v30, %s1369_s11  ;;  %v372_v7 = vmax.f32 %v364_v3, 0.0  ;;  %v650_v3 = vld [vmem:[#allocation2 + $0x140] sm:$0xff] }
  0xbd   : > { %624 = vrot.lane.b32.xlu0 %v1519_v30, %s1370_s12  ;;  %557 = vrot.lane.b32.xlu1 %v1521_v31, %s1369_s11  ;;  %v373_v22 = vmax.f32 %v365_v15, 0.0 }
  0xbe   : > { %v380_v14 = vmin.f32 %v372_v7, 6.0  ;;  %v651_v7 = vld [vmem:[#allocation2 + $0x148] sm:$0xff] }
  0xbf   : > { %v381_v36 = vmin.f32 %v373_v22, 6.0 }
  0xc0   : > { %v388_v21 = vmul.f32 %v380_v14, %v337_v2  ;;  %v609_v14 = vmul.f32 %v601_v0, %v1521_v31 }
  0xc1   : > { %v389_v42 = vmul.f32 %v381_v36, %v356_v8  ;;  %v608_v8 = vmul.f32 %v600_v58, %v1519_v30  ;;  %v478_v58 = vld [vmem:[#allocation2 + $0x58] sm:$0xff] }
  0xc2   : > { %v1635_v35 = vmul.f32 0.16666667, %v388_v21 }
  0xc3   : > { %v1648_v51 = vmul.f32 0.16666667, %v389_v42 }
  0xc4   : > { %632 = vrot.lane.b32.xlu2 %v1521_v31, %s1370_s12 }
  0xc5   : > { %674 = vrot.lane.b32.xlu0 %v1519_v30, %s1371_s13  ;;  %732 = vrot.lane.b32.xlu1 %v1521_v31, %s1372_s14 }
  0xcc   : > { %682 = vrot.lane.b32.xlu2 %v1521_v31, %s1371_s13 }
  0xcd   : > { %782 = vrot.lane.b32.xlu0 %v1521_v31, %s1373_s15  ;;  %774 = vrot.lane.b32.xlu1 %v1519_v30, %s1373_s15  ;;  %v701_v31 = vld [vmem:[#allocation2 + $0x188] sm:$0xff] }
  0xd4   : > { %724 = vrot.lane.b32.xlu2 %v1519_v30, %s1372_s14  ;;  %v700_v30 = vld [vmem:[#allocation2 + $0x180] sm:$0xff] }
  0xd5   : > { %451 = vrot.lane.b32.xlu0 %v1553_v45, %s1367_s9  ;;  %408 = vrot.lane.b32.xlu1 %v1555_v46, %s1366_s29 }
  0xdc   : > { %400 = vrot.lane.b32.xlu2 %v1553_v45, %s1366_s29 }
  0xdd   : > { %551 = vrot.lane.b32.xlu0 %v1553_v45, %s1369_s11  ;;  %509 = vrot.lane.b32.xlu1 %v1555_v46, %s1368_s10 }
  0xe4   : > { %459 = vrot.lane.b32.xlu2 %v1555_v46, %s1367_s9 }
  0xe5   : > { %634 = vrot.lane.b32.xlu0 %v1555_v46, %s1370_s12  ;;  %626 = vrot.lane.b32.xlu1 %v1553_v45, %s1370_s12 }
  0xec   : > { %501 = vrot.lane.b32.xlu2 %v1553_v45, %s1368_s10 }
  0xed   : > { %684 = vrot.lane.b32.xlu0 %v1555_v46, %s1371_s13  ;;  %676 = vrot.lane.b32.xlu1 %v1553_v45, %s1371_s13 }
  0xf4   : > { %559 = vrot.lane.b32.xlu2 %v1555_v46, %s1369_s11 }
  0xf5   : > { %726 = vrot.lane.b32.xlu0 %v1553_v45, %s1372_s14  ;;  %784 = vrot.lane.b32.xlu1 %v1555_v46, %s1373_s15 }
  0xfc   : > { %734 = vrot.lane.b32.xlu2 %v1555_v46, %s1372_s14 }
  0xfd   : > { %402 = vrot.lane.b32.xlu0 %v1587_v60, %s1366_s29  ;;  %410 = vrot.lane.b32.xlu1 %v1589_v61, %s1366_s29 }
 0x104   : > { %776 = vrot.lane.b32.xlu2 %v1553_v45, %s1373_s15 }
 0x105   : > { %461 = vrot.lane.b32.xlu0 %v1589_v61, %s1367_s9  ;;  %511 = vrot.lane.b32.xlu1 %v1589_v61, %s1368_s10 }
 0x106   : > { %v399_v62 = vpop.permute.xlu2 %398 }
 0x10c   : > { %453 = vrot.lane.b32.xlu2 %v1587_v60, %s1367_s9 }
 0x10d   : > { %503 = vrot.lane.b32.xlu0 %v1587_v60, %s1368_s10  ;;  %628 = vrot.lane.b32.xlu1 %v1587_v60, %s1370_s12 }
 0x10e   : > { %v450_v1 = vpop.permute.xlu2 %449 }
 0x114   : > { %553 = vrot.lane.b32.xlu2 %v1587_v60, %s1369_s11 }
 0x115   : > { %561 = vrot.lane.b32.xlu0 %v1589_v61, %s1369_s11  ;;  %686 = vrot.lane.b32.xlu1 %v1589_v61, %s1371_s13 }
 0x116   : > { %v1615_v6 = vpop.permute.xlu2 %549 }
 0x11c   : > { %636 = vrot.lane.b32.xlu2 %v1589_v61, %s1370_s12 }
 0x11d   : > { %678 = vrot.lane.b32.xlu0 %v1587_v60, %s1371_s13  ;;  %778 = vrot.lane.b32.xlu1 %v1587_v60, %s1373_s15 }
 0x11e   : > { %v633_v20 = vpop.permute.xlu2 %632 }
 0x11f   : > { %v458_v23 = vpop.permute.xlu1 %457  ;;  %v407_v24 = vpop.permute.xlu0 %406 }
 0x120   : > { %v466_v25 = vsel %vm465_vm1, %v450_v1, %v458_v23  ;;  %v470_v26 = vsel %vm465_vm1, %v458_v23, %v450_v1  ;;  %v417_v27 = vsel %vm416_vm2, %v399_v62, %v407_v24  ;;  %v421_v28 = vsel %vm416_vm2, %v407_v24, %v399_v62 }
 0x121   : > { %v483_v29 = vmul.f32 %v475_v16, %v470_v26  ;;  %v484_v32 = vmul.f32 %v476_v17, %v466_v25  ;;  %v433_v33 = vmul.f32 %v425_v18, %v421_v28  ;;  %v434_v34 = vmul.f32 %v426_v19, %v417_v27  ;;  %v750_v28 = vld [vmem:[#allocation2 + $0x1c0] sm:$0xff] }
 0x122   : > { %v1374_v18 = vmov 1  }
 0x123   : > { %v491_v37 = vadd.f32 %v483_v29, %v433_v33  ;;  %v492_v38 = vadd.f32 %v484_v32, %v434_v34  ;;  %1248 = vset.pattern.permute.xlu1 %v1374_v18  ;;  %1247 = vset.pattern.permute.xlu0 %v1374_v18  ;;  %v751_v29 = vld [vmem:[#allocation2 + $0x1c8] sm:$0xff] }
 0x124   : > { %728 = vrot.lane.b32.xlu2 %v1587_v60, %s1372_s14 }
 0x125   : > { %736 = vrot.lane.b32.xlu0 %v1589_v61, %s1372_s14  ;;  %455 = vrot.lane.b32.xlu1 %v1635_v35, %s1367_s9 }
 0x126   : > { %v683_v41 = vpop.permute.xlu2 %682  ;;  %1246 = vset.pattern.permute.xlu2 %v1374_v18  ;;  %v527_v18 = vld [vmem:[#allocation2 + $0x90] sm:$0xff] }
 0x127   : > { %v508_v43 = vpop.permute.xlu0 %507  ;;  %v500_v44 = vpop.permute.xlu1 %499 }
 0x128   : > { %v516_v47 = vsel %vm515_vm3, %v500_v44, %v508_v43  ;;  %v520_v48 = vsel %vm515_vm3, %v508_v43, %v500_v44  ;;  %v801_v44 = vld [vmem:[#allocation2 + $0x208] sm:$0xff] }
 0x129   : > { %v533_v49 = vmul.f32 %v525_v39, %v520_v48  ;;  %v534_v50 = vmul.f32 %v526_v40, %v516_v47 }
 0x12b   : > { %v541_v52 = vadd.f32 %v533_v49, %v491_v37  ;;  %v542_v53 = vadd.f32 %v534_v50, %v492_v38 }
 0x12c   : > { %786 = vrot.lane.b32.xlu2 %v1589_v61, %s1373_s15 }
 0x12d   : > { %412 = vrot.lane.b32.xlu0 %v1648_v51, %s1366_s29  ;;  %513 = vrot.lane.b32.xlu1 %v1648_v51, %s1368_s10 }
 0x12e   : > { %v725_v56 = vpop.permute.xlu2 %724 }
 0x12f   : > { %v625_v57 = vpop.permute.xlu0 %624  ;;  %v558_v59 = vpop.permute.xlu1 %557 }
 0x130   : > { %v641_v62 = vsel %vm640_vm4, %v625_v57, %v633_v20  ;;  %v645_v63 = vsel %vm640_vm4, %v633_v20, %v625_v57  ;;  %v566_v1 = vsel %vm565_vm5, %v1615_v6, %v558_v59  ;;  %v570_v2 = vsel %vm565_vm5, %v558_v59, %v1615_v6  ;;  %v477_v57 = vld [vmem:[#allocation2 + $0x50] sm:$0xff] }
 0x131   : > { %v583_v4 = vmul.f32 %v575_v54, %v570_v2  ;;  %v584_v5 = vmul.f32 %v576_v55, %v566_v1  ;;  %v658_v17 = vmul.f32 %v650_v3, %v641_v62  ;;  %v659_v19 = vmul.f32 %v651_v7, %v645_v63  ;;  %v427_v59 = vld [vmem:[#allocation2 + $0x10] sm:$0xff]  ;;  %v428_v62 = vld [vmem:[#allocation2 + $0x18] sm:$0xff] }
 0x133   : > { %v591_v15 = vadd.f32 %v583_v4, %v541_v52  ;;  %v592_v16 = vadd.f32 %v584_v5, %v542_v53 }
 0x134   : > { %404 = vrot.lane.b32.xlu2 %v1635_v35, %s1366_s29 }
 0x135   : > { %v616_v6 = vadd.f32 %v608_v8, %v591_v15  ;;  %v617_v20 = vadd.f32 %v609_v14, %v592_v16  ;;  %505 = vrot.lane.b32.xlu0 %v1635_v35, %s1368_s10  ;;  %555 = vrot.lane.b32.xlu1 %v1635_v35, %s1369_s11 }
 0x136   : > { %v401_v21 = vpop.permute.xlu2 %400 }
 0x137   : > { %v675_v22 = vpop.permute.xlu0 %674  ;;  %v666_v23 = vadd.f32 %v658_v17, %v616_v6  ;;  %v667_v24 = vadd.f32 %v659_v19, %v617_v20  ;;  %v733_v25 = vpop.permute.xlu1 %732  ;;  %v528_v19 = vld [vmem:[#allocation2 + $0x98] sm:$0xff] }
 0x138   : > { %v691_v26 = vsel %vm690_vm6, %v675_v22, %v683_v41  ;;  %v695_v27 = vsel %vm690_vm6, %v683_v41, %v675_v22  ;;  %v741_v32 = vsel %vm740_vm7, %v725_v56, %v733_v25  ;;  %v745_v33 = vsel %vm740_vm7, %v733_v25, %v725_v56  ;;  %v800_v41 = vld [vmem:[#allocation2 + $0x200] sm:$0xff]  ;;  %v577_v22 = vld [vmem:[#allocation2 + $0xd0] sm:$0xff] }
 0x139   : > { %v708_v34 = vmul.f32 %v700_v30, %v691_v26  ;;  %v709_v36 = vmul.f32 %v701_v31, %v695_v27  ;;  %v758_v39 = vmul.f32 %v750_v28, %v741_v32  ;;  %v759_v40 = vmul.f32 %v751_v29, %v745_v33 }
 0x13b   : > { %v716_v37 = vadd.f32 %v708_v34, %v666_v23  ;;  %v717_v38 = vadd.f32 %v709_v36, %v667_v24  ;;  %v578_v23 = vld [vmem:[#allocation2 + $0xd8] sm:$0xff]  ;;  %v602_v34 = vld [vmem:[#allocation2 + $0x110] sm:$0xff] }
 0x13c   : > { %463 = vrot.lane.b32.xlu2 %v1648_v51, %s1367_s9  ;;  %v603_v36 = vld [vmem:[#allocation2 + $0x118] sm:$0xff] }
 0x13d   : > { %v766_v42 = vadd.f32 %v758_v39, %v716_v37  ;;  %v767_v43 = vadd.f32 %v759_v40, %v717_v38  ;;  %680 = vrot.lane.b32.xlu0 %v1635_v35, %s1371_s13  ;;  %630 = vrot.lane.b32.xlu1 %v1635_v35, %s1370_s12  ;;  %v652_v39 = vld [vmem:[#allocation2 + $0x150] sm:$0xff]  ;;  %v653_v40 = vld [vmem:[#allocation2 + $0x158] sm:$0xff] }
 0x13e   : > { %v460_v47 = vpop.permute.xlu2 %459 }
 0x13f   : > { %v783_v48 = vpop.permute.xlu0 %782  ;;  %v775_v49 = vpop.permute.xlu1 %774 }
 0x140   : > { %v791_v50 = vsel %vm790_vm8, %v775_v49, %v783_v48  ;;  %v795_v52 = vsel %vm790_vm8, %v783_v48, %v775_v49 }
 0x141   : > { %v808_v53 = vmul.f32 %v800_v41, %v791_v50  ;;  %v809_v54 = vmul.f32 %v801_v44, %v795_v52  ;;  %v610_v41 = vmul.f32 %v602_v34, %v1553_v45  ;;  %v611_v44 = vmul.f32 %v603_v36, %v1555_v46  ;;  %v480_v34 = vld [vmem:[#allocation2 + $0x68] sm:$0xff] }
 0x143   : > { %v1697_v55 = vadd.f32 %v809_v54, %v767_v43  ;;  %v1699_v56 = vadd.f32 %v808_v53, %v766_v42 }
 0x144   : > { %563 = vrot.lane.b32.xlu2 %v1648_v51, %s1369_s11  ;;  %s259_s11 = sand.u32 1, %s1352_s22  }
 0x145   : > { %738 = vrot.lane.b32.xlu0 %v1648_v51, %s1372_s14  ;;  %688 = vrot.lane.b32.xlu1 %v1648_v51, %s1371_s13  ;;  %s1177_s13 = sshll.u32 %s1435_s25, 5  ;;  %s1067_s25 = scalar_lea.sflag [#allocation4], %s259_s11 }
 0x146   : > { %v502_v63 = vpop.permute.xlu2 %501  ;;  %s1078_s17 = scalar_lea.hbm %s1949_s6, %s1177_s13 }
 0x147   : > { %v452_v0 = vpop.permute.xlu0 %451  ;;  %v409_v1 = vpop.permute.xlu1 %408  ;;  %s1081_s19 = sshll.u32 %s1078_s17, 4  ;;  %s1082_s19 = int_to_ptr.hbm [resolvable:$true] %s1081_s19 }
 0x148   : > { %v467_v2 = vsel %vm465_vm1, %v452_v0, %v460_v47  ;;  %v471_v3 = vsel %vm465_vm1, %v460_v47, %v452_v0  ;;  %v418_v4 = vsel %vm416_vm2, %v401_v21, %v409_v1  ;;  %v422_v5 = vsel %vm416_vm2, %v409_v1, %v401_v21  ;;  %s1308_s26 = sshra.s32 %s1082_s19, 4  ;;  %s1309_s26 = int_to_ptr.hbm [resolvable:$true] %s1308_s26 }
 0x149   : > { %v485_v7 = vmul.f32 %v477_v57, %v471_v3  ;;  %v486_v8 = vmul.f32 %v478_v58, %v467_v2  ;;  %v435_v14 = vmul.f32 %v427_v59, %v422_v5  ;;  %v436_v15 = vmul.f32 %v428_v62, %v418_v4  ;;  %v702_v57 = vld [vmem:[#allocation2 + $0x190] sm:$0xff]  ;;  %v703_v58 = vld [vmem:[#allocation2 + $0x198] sm:$0xff]  ;;  %s1310_s28 = scalar_lea.hbm %s1309_s26, 32  ;;  %p1315_p3 = scmp.lt.s32.totalorder %s1309_s26, %s1949_s6 }
 0x14a   : > { %v752_v4 = vld [vmem:[#allocation2 + $0x1d0] sm:$0xff]  ;;  %v753_v5 = vld [vmem:[#allocation2 + $0x1d8] sm:$0xff]  ;;  %p1311_p0 = scmp.ne.s32.totalorder %s1309_s26, %s1310_s28 }
 0x14b   : > { %v493_v16 = vadd.f32 %v485_v7, %v435_v14  ;;  %v494_v17 = vadd.f32 %v486_v8, %v436_v15 }
 0x14c   : > { %638 = vrot.lane.b32.xlu2 %v1648_v51, %s1370_s12  ;;  %s1162_s12 = sshll.u32 %s259_s11, 5  ;;  %p1312_p1 = pnand %p1311_p0, %p1452_p5 }
 0x14d   : > { %780 = vrot.lane.b32.xlu0 %v1635_v35, %s1373_s15  ;;  %788 = vrot.lane.b32.xlu1 %v1648_v51, %s1373_s15 }
 0x14e   : > { %v560_v6 = vpop.permute.xlu2 %559  ;;  %p1313_p2 = pneg %p1312_p1 }
 0x14f   : > { %v552_v20 = vpop.permute.xlu0 %551  ;;  %v510_v30 = vpop.permute.xlu1 %509 }
 0x150   : > { %v517_v31 = vsel %vm515_vm3, %v502_v63, %v510_v30  ;;  %v521_v21 = vsel %vm515_vm3, %v510_v30, %v502_v63  ;;  %v567_v24 = vsel %vm565_vm5, %v552_v20, %v560_v6  ;;  %v571_v25 = vsel %vm565_vm5, %v560_v6, %v552_v20 }
 0x151   : > { %v535_v26 = vmul.f32 %v527_v18, %v521_v21  ;;  %v536_v27 = vmul.f32 %v528_v19, %v517_v31  ;;  %v585_v32 = vmul.f32 %v577_v22, %v571_v25  ;;  %v586_v33 = vmul.f32 %v578_v23, %v567_v24 }
 0x153   : > { %v543_v28 = vadd.f32 %v535_v26, %v493_v16  ;;  %v544_v29 = vadd.f32 %v536_v27, %v494_v17  ;;  %v802_v16 = vld [vmem:[#allocation2 + $0x210] sm:$0xff]  ;;  %v803_v17 = vld [vmem:[#allocation2 + $0x218] sm:$0xff] }
 0x154   : > { %730 = vrot.lane.b32.xlu2 %v1635_v35, %s1372_s14  ;;  %s261_s14 = scalar_lea.vmem [#allocation5], %s1162_s12  ;;  %s1314_s12 = scalar_lea.hbm %s1949_s6, 64 }
 0x155   : > { %v593_v37 = vadd.f32 %v585_v32, %v543_v28  ;;  %v594_v38 = vadd.f32 %v586_v33, %v544_v29  ;;  %829 = vperm.xlu0 %1247, %v1504_v12   ;;  %833 = vperm.xlu1 %1248, %v1498_v11   ;;  %v429_v29 = vld [vmem:[#allocation2 + $0x20] sm:$0xff]  ;;  %v430_v32 = vld [vmem:[#allocation2 + $0x28] sm:$0xff]  ;;  %s1079_s18 = sshll.u32 %s261_s14, 4  ;;  %p1316_p4 = scmp.lt.s32.totalorder %s1314_s12, %s1310_s28  ;;  %s1080_s18 = int_to_ptr.vmem [resolvable:$true] %s1079_s18 }
 0x156   : > { %v735_v42 = vpop.permute.xlu2 %734  ;;  %v479_v33 = vld [vmem:[#allocation2 + $0x60] sm:$0xff] }
 0x157   : > { %v635_v43 = vpop.permute.xlu0 %634  ;;  %v627_v47 = vpop.permute.xlu1 %626  ;;  %v618_v50 = vadd.f32 %v610_v41, %v593_v37  ;;  %v619_v52 = vadd.f32 %v611_v44, %v594_v38  ;;  %p1317_p7 = por %p1316_p4, %p1315_p3 }
 0x158   : > { %v642_v48 = vsel %vm640_vm4, %v627_v47, %v635_v43  ;;  %v646_v49 = vsel %vm640_vm4, %v635_v43, %v627_v47 }
 0x159   : > { %v660_v12 = vmul.f32 %v652_v39, %v642_v48  ;;  %v661_v53 = vmul.f32 %v653_v40, %v646_v49  ;;  %v530_v49 = vld [vmem:[#allocation2 + $0xa8] sm:$0xff]  ;;  %p1318_p8 = pnand %p1317_p7, %p1313_p2 }
 0x15b   : > { %v668_v11 = vadd.f32 %v660_v12, %v618_v50  ;;  %v669_v54 = vadd.f32 %v661_v53, %v619_v52 }
 0x15c   : > { %825 = vperm.xlu2 %1246, %v1492_v10  }
 0x15e   : > { %v777_v45 = vpop.permute.xlu2 %776 }
 0x15f   : > { %v685_v59 = vpop.permute.xlu0 %684  ;;  %v677_v46 = vpop.permute.xlu1 %676 }
 0x160   : > { %v692_v62 = vsel %vm690_vm6, %v677_v46, %v685_v59  ;;  %v696_v63 = vsel %vm690_vm6, %v685_v59, %v677_v46  ;;  %v579_v59 = vld [vmem:[#allocation2 + $0xe0] sm:$0xff]  ;;  %v580_v46 = vld [vmem:[#allocation2 + $0xe8] sm:$0xff] }
 0x161   : > { %v710_v0 = vmul.f32 %v702_v57, %v692_v62  ;;  %v711_v1 = vmul.f32 %v703_v58, %v696_v63 }
 0x163   : > { %v718_v2 = vadd.f32 %v710_v0, %v668_v11  ;;  %v719_v3 = vadd.f32 %v711_v1, %v669_v54  ;;  %v529_v54 = vld [vmem:[#allocation2 + $0xa0] sm:$0xff] }
 0x164   : > { %837 = vperm.xlu2 %1246, %v1509_v13   ;;  %v604_v1 = vld [vmem:[#allocation2 + $0x120] sm:$0xff] }
 0x166   : > { %v454_v10 = vpop.permute.xlu2 %453 }
 0x167   : > { %v727_v7 = vpop.permute.xlu0 %726  ;;  %v785_v8 = vpop.permute.xlu1 %784 }
 0x168   : > { %v742_v14 = vsel %vm740_vm7, %v727_v7, %v735_v42  ;;  %v746_v15 = vsel %vm740_vm7, %v735_v42, %v727_v7  ;;  %v792_v18 = vsel %vm790_vm8, %v777_v45, %v785_v8  ;;  %v796_v19 = vsel %vm790_vm8, %v785_v8, %v777_v45  ;;  %v654_v8 = vld [vmem:[#allocation2 + $0x160] sm:$0xff] }
 0x169   : > { %v760_v13 = vmul.f32 %v752_v4, %v742_v14  ;;  %v761_v6 = vmul.f32 %v753_v5, %v746_v15  ;;  %v810_v31 = vmul.f32 %v802_v16, %v792_v18  ;;  %v811_v21 = vmul.f32 %v803_v17, %v796_v19  ;;  %v655_v14 = vld [vmem:[#allocation2 + $0x168] sm:$0xff] }
 0x16a   : > { %v612_v17 = vmul.f32 %v604_v1, %v1587_v60 }
 0x16b   : > { %v768_v20 = vadd.f32 %v760_v13, %v718_v2  ;;  %v769_v30 = vadd.f32 %v761_v6, %v719_v3  ;;  %v605_v2 = vld [vmem:[#allocation2 + $0x128] sm:$0xff] }
 0x16c   : > { %v613_v18 = vmul.f32 %v605_v2, %v1589_v61  ;;  %v531_v2 = vld [vmem:[#allocation2 + $0xb0] sm:$0xff] }
 0x16d   : > { %v1753_v22 = vadd.f32 %v810_v31, %v768_v20  ;;  %v1755_v23 = vadd.f32 %v811_v21, %v769_v30 }
 0x16e   : > { %v554_v24 = vpop.permute.xlu2 %553 }
 0x16f   : > { %v403_v25 = vpop.permute.xlu0 %402  ;;  %v411_v26 = vpop.permute.xlu1 %410 }
 0x170   : > { %v419_v27 = vsel %vm416_vm2, %v403_v25, %v411_v26  ;;  %v423_v28 = vsel %vm416_vm2, %v411_v26, %v403_v25 }
 0x171   : > { %v437_v42 = vmul.f32 %v429_v29, %v423_v28  ;;  %v438_v43 = vmul.f32 %v430_v32, %v419_v27  ;;  %v704_v28 = vld [vmem:[#allocation2 + $0x1a0] sm:$0xff]  ;;  %v705_v29 = vld [vmem:[#allocation2 + $0x1a8] sm:$0xff] }
 0x176   : > { %v637_v36 = vpop.permute.xlu2 %636 }
 0x177   : > { %v462_v37 = vpop.permute.xlu0 %461  ;;  %v512_v38 = vpop.permute.xlu1 %511 }
 0x178   : > { %v468_v39 = vsel %vm465_vm1, %v454_v10, %v462_v37  ;;  %v472_v40 = vsel %vm465_vm1, %v462_v37, %v454_v10 }
 0x179   : > { %v487_v41 = vmul.f32 %v479_v33, %v472_v40  ;;  %v488_v44 = vmul.f32 %v480_v34, %v468_v39  ;;  %v754_v34 = vld [vmem:[#allocation2 + $0x1e0] sm:$0xff] }
 0x17b   : > { %v495_v47 = vadd.f32 %v487_v41, %v437_v42  ;;  %v496_v48 = vadd.f32 %v488_v44, %v438_v43 }
 0x17e   : > { %v729_v50 = vpop.permute.xlu2 %728 }
 0x17f   : > { %v504_v52 = vpop.permute.xlu0 %503  ;;  %v629_v12 = vpop.permute.xlu1 %628 }
 0x180   : > { %v518_v53 = vsel %vm515_vm3, %v504_v52, %v512_v38  ;;  %v522_v57 = vsel %vm515_vm3, %v512_v38, %v504_v52  ;;  %v643_v15 = vsel %vm640_vm4, %v629_v12, %v637_v36  ;;  %v647_v16 = vsel %vm640_vm4, %v637_v36, %v629_v12  ;;  %v755_v36 = vld [vmem:[#allocation2 + $0x1e8] sm:$0xff] }
 0x181   : > { %v538_v11 = vmul.f32 %v530_v49, %v518_v53  ;;  %v537_v45 = vmul.f32 %v529_v54, %v522_v57  ;;  %v662_v6 = vmul.f32 %v654_v8, %v643_v15  ;;  %v663_v20 = vmul.f32 %v655_v14, %v647_v16 }
 0x183   : > { %v546_v58 = vadd.f32 %v538_v11, %v496_v48  ;;  %v545_v5 = vadd.f32 %v537_v45, %v495_v47  ;;  %v432_v45 = vld [vmem:[#allocation2 + $0x38] sm:$0xff] }
 0x186   : > { %v1769_v62 = vpop.permute.xlu2 %786 }
 0x187   : > { %v562_v63 = vpop.permute.xlu0 %561  ;;  %v687_v0 = vpop.permute.xlu1 %686 }
 0x188   : > { %v568_v3 = vsel %vm565_vm5, %v554_v24, %v562_v63  ;;  %v572_v4 = vsel %vm565_vm5, %v562_v63, %v554_v24  ;;  %v482_v63 = vld [vmem:[#allocation2 + $0x78] sm:$0xff] }
 0x189   : > { %v587_v10 = vmul.f32 %v579_v59, %v572_v4  ;;  %v588_v7 = vmul.f32 %v580_v46, %v568_v3  ;;  %v481_v46 = vld [vmem:[#allocation2 + $0x70] sm:$0xff]  ;;  %v532_v3 = vld [vmem:[#allocation2 + $0xb8] sm:$0xff] }
 0x18b   : > { %v595_v19 = vadd.f32 %v587_v10, %v545_v5  ;;  %v596_v13 = vadd.f32 %v588_v7, %v546_v58  ;;  %v431_v58 = vld [vmem:[#allocation2 + $0x30] sm:$0xff] }
 0x18d   : > { %v620_v30 = vadd.f32 %v612_v17, %v595_v19  ;;  %v621_v31 = vadd.f32 %v613_v18, %v596_v13 }
 0x18e   : > { %v405_v21 = vpop.permute.xlu2 %404 }
 0x18f   : > { %v679_v24 = vpop.permute.xlu0 %678  ;;  %v670_v25 = vadd.f32 %v662_v6, %v620_v30  ;;  %v671_v26 = vadd.f32 %v663_v20, %v621_v31  ;;  %v1781_v27 = vpop.permute.xlu1 %778  ;;  %v581_v20 = vld [vmem:[#allocation2 + $0xf0] sm:$0xff]  ;;  %v582_v30 = vld [vmem:[#allocation2 + $0xf8] sm:$0xff] }
 0x190   : > { %v693_v32 = vsel %vm690_vm6, %v679_v24, %v687_v0  ;;  %v697_v60 = vsel %vm690_vm6, %v687_v0, %v679_v24 }
 0x191   : > { %v712_v61 = vmul.f32 %v704_v28, %v693_v32  ;;  %v713_v33 = vmul.f32 %v705_v29, %v697_v60  ;;  %v606_v29 = vld [vmem:[#allocation2 + $0x130] sm:$0xff]  ;;  %v607_v32 = vld [vmem:[#allocation2 + $0x138] sm:$0xff] }
 0x192   : > { %v656_v60 = vld [vmem:[#allocation2 + $0x170] sm:$0xff] }
 0x193   : > { %v720_v43 = vadd.f32 %v712_v61, %v670_v25  ;;  %v721_v41 = vadd.f32 %v713_v33, %v671_v26  ;;  %v657_v61 = vld [vmem:[#allocation2 + $0x178] sm:$0xff] }
 0x196   : > { %v464_v37 = vpop.permute.xlu2 %463 }
 0x197   : > { %v737_v38 = vpop.permute.xlu0 %736  ;;  %v456_v39 = vpop.permute.xlu1 %455 }
 0x198   : > { %v743_v40 = vsel %vm740_vm7, %v729_v50, %v737_v38  ;;  %v747_v42 = vsel %vm740_vm7, %v737_v38, %v729_v50  ;;  %v469_v0 = vsel %vm465_vm1, %v456_v39, %v464_v37  ;;  %v473_v1 = vsel %vm465_vm1, %v464_v37, %v456_v39 }
 0x199   : > { %v762_v44 = vmul.f32 %v754_v34, %v743_v40  ;;  %v763_v47 = vmul.f32 %v755_v36, %v747_v42  ;;  %v489_v8 = vmul.f32 %v481_v46, %v473_v1  ;;  %v490_v14 = vmul.f32 %v482_v63, %v469_v0  ;;  %v706_v40 = vld [vmem:[#allocation2 + $0x1b0] sm:$0xff]  ;;  %v707_v42 = vld [vmem:[#allocation2 + $0x1b8] sm:$0xff] }
 0x19a   : > { %v614_v38 = vmul.f32 %v606_v29, %v1635_v35  ;;  %v615_v39 = vmul.f32 %v607_v32, %v1648_v51  ;;  %v756_v63 = vld [vmem:[#allocation2 + $0x1f0] sm:$0xff]  ;;  %v757_v0 = vld [vmem:[#allocation2 + $0x1f8] sm:$0xff] }
 0x19b   : > { %v1791_v48 = vadd.f32 %v762_v44, %v720_v43  ;;  %v1793_v49 = vadd.f32 %v763_v47, %v721_v41 }
 0x19e   : > { %v564_v52 = vpop.permute.xlu2 %563 }
 0x19f   : > { %v413_v12 = vpop.permute.xlu0 %412  ;;  %v514_v53 = vpop.permute.xlu1 %513 }
 0x1a0   : > { %v420_v59 = vsel %vm416_vm2, %v405_v21, %v413_v12  ;;  %v424_v50 = vsel %vm416_vm2, %v413_v12, %v405_v21 }
 0x1a1   : > { %v439_v10 = vmul.f32 %v431_v58, %v424_v50  ;;  %v440_v7 = vmul.f32 %v432_v45, %v420_v59 }
 0x1a3   : > { %v497_v18 = vadd.f32 %v489_v8, %v439_v10  ;;  %v498_v19 = vadd.f32 %v490_v14, %v440_v7  ;;  %v806_v7 = vld [vmem:[#allocation2 + $0x230] sm:$0xff]  ;;  %v807_v8 = vld [vmem:[#allocation2 + $0x238] sm:$0xff]  ;;  %v793_v14 = vsel %vm790_vm8, %v1781_v27, %v1769_v62 }
 0x1a6   : > { %v639_v11 = vpop.permute.xlu2 %638 }
 0x1a7   : > { %v506_v54 = vpop.permute.xlu0 %505  ;;  %v556_v57 = vpop.permute.xlu1 %555 }
 0x1a8   : > { %v519_v4 = vsel %vm515_vm3, %v506_v54, %v514_v53  ;;  %v523_v5 = vsel %vm515_vm3, %v514_v53, %v506_v54  ;;  %v569_v31 = vsel %vm565_vm5, %v556_v57, %v564_v52  ;;  %v573_v21 = vsel %vm565_vm5, %v564_v52, %v556_v57 }
 0x1a9   : > { %v539_v15 = vmul.f32 %v531_v2, %v523_v5  ;;  %v540_v16 = vmul.f32 %v532_v3, %v519_v4  ;;  %v589_v26 = vmul.f32 %v581_v20, %v573_v21  ;;  %v590_v28 = vmul.f32 %v582_v30, %v569_v31  ;;  %v804_v31 = vld [vmem:[#allocation2 + $0x220] sm:$0xff]  ;;  %v805_v21 = vld [vmem:[#allocation2 + $0x228] sm:$0xff] }
 0x1ab   : > { %v547_v24 = vadd.f32 %v539_v15, %v497_v18  ;;  %v548_v25 = vadd.f32 %v540_v16, %v498_v19  ;;  %v797_v15 = vsel %vm790_vm8, %v1769_v62, %v1781_v27 }
 0x1ad   : > { %v597_v36 = vadd.f32 %v589_v26, %v547_v24  ;;  %v598_v37 = vadd.f32 %v590_v28, %v548_v25 }
 0x1ae   : > { %v731_v17 = vpop.permute.xlu2 %730 }
 0x1af   : > { %v681_v13 = vpop.permute.xlu0 %680  ;;  %v631_v6 = vpop.permute.xlu1 %630  ;;  %v622_v35 = vadd.f32 %v614_v38, %v597_v36  ;;  %v623_v57 = vadd.f32 %v615_v39, %v598_v37 }
 0x1b0   : > { %v644_v33 = vsel %vm640_vm4, %v631_v6, %v639_v11  ;;  %v648_v34 = vsel %vm640_vm4, %v639_v11, %v631_v6 }
 0x1b1   : > { %v664_v41 = vmul.f32 %v656_v60, %v644_v33  ;;  %v665_v44 = vmul.f32 %v657_v61, %v648_v34  ;;  %v812_v61 = vmul.f32 %v804_v31, %v793_v14  ;;  %v813_v33 = vmul.f32 %v805_v21, %v797_v15 }
 0x1b3   : > { %v672_v50 = vadd.f32 %v664_v41, %v622_v35  ;;  %v673_v46 = vadd.f32 %v665_v44, %v623_v57  ;;  %v820_v9 = vadd.f32 %v812_v61, %v1791_v48  ;;  %v821_v38 = vadd.f32 %v813_v33, %v1793_v49 }
 0x1b6   : > { %v826_v43 = vpop.permute.xlu2 %825 }
 0x1b7   : > { %v739_v47 = vpop.permute.xlu0 %738  ;;  %v689_v52 = vpop.permute.xlu1 %688  ;;  %v840_v12 = vadd.f32 %v826_v43, %v1699_v56  ;;  %v841_v53 = vadd.f32 %v826_v43, %v1697_v55 }
 0x1b8   : > { %v694_v11 = vsel %vm690_vm6, %v681_v13, %v689_v52  ;;  %v698_v54 = vsel %vm690_vm6, %v689_v52, %v681_v13  ;;  %v744_v56 = vsel %vm740_vm7, %v731_v17, %v739_v47  ;;  %v748_v55 = vsel %vm740_vm7, %v739_v47, %v731_v17 }
 0x1b9   : > { %v714_v51 = vmul.f32 %v706_v40, %v694_v11  ;;  %v715_v58 = vmul.f32 %v707_v42, %v698_v54  ;;  %v848_v45 = vadd.f32 3.0, %v840_v12  ;;  %v849_v59 = vadd.f32 3.0, %v841_v53 }
 0x1ba   : > { %v764_v16 = vmul.f32 %v756_v63, %v744_v56  ;;  %v765_v17 = vmul.f32 %v757_v0, %v748_v55 }
 0x1bb   : > { %v856_v1 = vmax.f32 %v848_v45, 0.0  ;;  %v857_v2 = vmax.f32 %v849_v59, 0.0  ;;  %v722_v3 = vadd.f32 %v714_v51, %v672_v50  ;;  %v723_v4 = vadd.f32 %v715_v58, %v673_v46 }
 0x1bd   : > { %v864_v5 = vmin.f32 %v856_v1, 6.0  ;;  %v865_v10 = vmin.f32 %v857_v2, 6.0  ;;  %v772_v26 = vadd.f32 %v764_v16, %v722_v3  ;;  %v773_v28 = vadd.f32 %v765_v17, %v723_v4 }
 0x1be   : > { %v838_v29 = vpop.permute.xlu2 %837 }
 0x1bf   : > { %v781_v18 = vpop.permute.xlu0 %780  ;;  %v789_v19 = vpop.permute.xlu1 %788  ;;  %v872_v13 = vmul.f32 %v864_v5, %v840_v12  ;;  %v873_v6 = vmul.f32 %v865_v10, %v841_v53 }
 0x1c0   : > { %v794_v20 = vsel %vm790_vm8, %v781_v18, %v789_v19  ;;  %v798_v30 = vsel %vm790_vm8, %v789_v19, %v781_v18 }
 0x1c1   : > { %v814_v24 = vmul.f32 %v806_v7, %v794_v20  ;;  %v815_v25 = vmul.f32 %v807_v8, %v798_v30  ;;  %v880_v62 = vmul.f32 0.16666667, %v872_v13  ;;  %v881_v27 = vmul.f32 0.16666667, %v873_v6 }
 0x1c2   : > { %v1375_v6 = vmov 256.0  }
 0x1c3   : > { %v822_v32 = vadd.f32 %v814_v24, %v772_v26  ;;  %v823_v60 = vadd.f32 %v815_v25, %v773_v28  ;;  %v892_v34 = vadd.f32 %v881_v27, %v880_v62  ;;  %1254 = vrcp.f32 %v1375_v6 }
 0x1c5   : > { %v846_v36 = vadd.f32 %v838_v29, %v822_v32  ;;  %v847_v37 = vadd.f32 %v838_v29, %v823_v60  ;;  %893 = vadd.xlane.f32.xlu1 %v892_v34  ;;  %v276_v29 = vld [vmem:[%s1946_s3] sm:$0xff] }
 0x1c7   : > { %v854_v39 = vadd.f32 3.0, %v846_v36  ;;  %v855_v40 = vadd.f32 3.0, %v847_v37  ;;  %v830_v42 = vpop.permute.xlu0 %829  ;;  %v834_v43 = vpop.permute.xlu1 %833 }
 0x1c8   : > { %v842_v41 = vadd.f32 %v830_v42, %v1753_v22  ;;  %v843_v44 = vadd.f32 %v830_v42, %v1755_v23  ;;  %v844_v47 = vadd.f32 %v834_v43, %v820_v9  ;;  %v845_v52 = vadd.f32 %v834_v43, %v821_v38 }
 0x1c9   : > { %v862_v12 = vmax.f32 %v854_v39, 0.0  ;;  %v863_v53 = vmax.f32 %v855_v40, 0.0  ;;  %v1255_v20 = vpop.eup %1254  ;;  %v279_v40 = vld [vmem:[%s1946_s3 + $0x18] sm:$0xff] }
 0x1ca   : > { %v850_v11 = vadd.f32 3.0, %v842_v41  ;;  %v851_v54 = vadd.f32 3.0, %v843_v44  ;;  %v852_v35 = vadd.f32 3.0, %v844_v47  ;;  %v853_v57 = vadd.f32 3.0, %v845_v52 }
 0x1cb   : > { %v870_v51 = vmin.f32 %v862_v12, 6.0  ;;  %v871_v48 = vmin.f32 %v863_v53, 6.0  ;;  %v905_v30 = vmul.f32 256.0, %v1255_v20  ;;  %vm909_vm9 = vweird.f32 %v1255_v20 }
 0x1cc   : > { %v858_v58 = vmax.f32 %v850_v11, 0.0  ;;  %v859_v49 = vmax.f32 %v851_v54, 0.0  ;;  %v860_v45 = vmax.f32 %v852_v35, 0.0  ;;  %v861_v59 = vmax.f32 %v853_v57, 0.0 }
 0x1cd   : > { %v878_v50 = vmul.f32 %v870_v51, %v846_v36  ;;  %v879_v23 = vmul.f32 %v871_v48, %v847_v37  ;;  %v906_v31 = vsub.f32 1.0, %v905_v30  ;;  %v278_v36 = vld [vmem:[%s1946_s3 + $0x10] sm:$0xff]  ;;  %v284_v51 = vld [vmem:[%s1946_s3 + $0x40] sm:$0x1] }
 0x1ce   : > { %v866_v46 = vmin.f32 %v858_v58, 6.0  ;;  %v867_v63 = vmin.f32 %v859_v49, 6.0  ;;  %v868_v22 = vmin.f32 %v860_v45, 6.0  ;;  %v869_v0 = vmin.f32 %v861_v59, 6.0  ;;  %v282_v45 = vld [vmem:[%s1946_s3 + $0x30] sm:$0xff]  ;;  %v281_v59 = vld [vmem:[%s1946_s3 + $0x28] sm:$0xff] }
 0x1cf   : > { %v886_v3 = vmul.f32 0.16666667, %v878_v50  ;;  %v887_v8 = vmul.f32 0.16666667, %v879_v23  ;;  %v907_v21 = vmul.f32 %v1255_v20, %v906_v31  ;;  %v280_v50 = vld [vmem:[%s1946_s3 + $0x20] sm:$0xff] }
 0x1d0   : > { %v874_v56 = vmul.f32 %v866_v46, %v842_v41  ;;  %v875_v55 = vmul.f32 %v867_v63, %v843_v44  ;;  %v876_v1 = vmul.f32 %v868_v22, %v844_v47  ;;  %v877_v2 = vmul.f32 %v869_v0, %v845_v52 }
 0x1d1   : > { %v901_v13 = vadd.f32 %v887_v8, %v886_v3  ;;  %v908_v24 = vadd.f32 %v1255_v20, %v907_v21 }
 0x1d2   : > { %v882_v4 = vmul.f32 0.16666667, %v874_v56  ;;  %v883_v5 = vmul.f32 0.16666667, %v875_v55  ;;  %v884_v10 = vmul.f32 0.16666667, %v876_v1 }
 0x1d3   : > { %v885_v7 = vmul.f32 0.16666667, %v877_v2  ;;  %v910_v25 = vsel %vm909_vm9, %v1255_v20, %v908_v24  ;;  %v283_v1 = vld [vmem:[%s1946_s3 + $0x38] sm:$0xff] }
 0x1d4   : > { %v895_v14 = vadd.f32 %v883_v5, %v882_v4  ;;  %v1000_v15 = vpack.c.bf16 %v886_v3, %v884_v10  ;;  %v998_v16 = vpack.c.bf16 %v882_v4, %v880_v62  ;;  %v999_v17 = vpack.c.bf16 %v883_v5, %v881_v27  ;;  %v277_v62 = vld [vmem:[%s1946_s3 + $0x8] sm:$0xff] }
 0x1d5   : > { %v898_v18 = vadd.f32 %v885_v7, %v884_v10  ;;  %v1001_v19 = vpack.c.bf16 %v887_v8, %v885_v7  ;;  %v1376_v4 = vmov 2   ;;  %v1256_v7 = vld [vmem:[%s1947_s4 + $0x10] sm:$0xff] }
 0x1d6   : > { %896 = vadd.xlane.f32.xlu2 %v895_v14  ;;  %1036 = vmatpush.bf16.msra.mxu2 %v1000_v15  ;;  %v1257_v14 = vld [vmem:[%s1947_s4 + $0x8] sm:$0xff] }
 0x1d7   : > { %899 = vadd.xlane.f32.xlu0 %v898_v18  ;;  %1050 = vmatpush.bf16.msra.mxu3 %v1001_v19 }
 0x1d8   : > { %1250 = vset.pattern.permute.xlu0 %v1376_v4  ;;  %1251 = vset.pattern.permute.xlu1 %v1376_v4 }
 0x1d9   : > { %1249 = vset.pattern.permute.xlu2 %v1376_v4 }
 0x1da   : > { %1037 = vmatpush.bf16.msra.mxu2 %v998_v16 }
 0x1db   : > { %1051 = vmatpush.bf16.msra.mxu3 %v999_v17  ;;  %v1258_v17 = vld [vmem:[%s1947_s4] sm:$0xff] }
 0x1de   : > { %902 = vadd.xlane.f32.xlu2 %v901_v13 }
 0x238   : > { %v894_v26 = vpop.xlane.xlu1 %893 }
 0x239   : > { %v911_v28 = vmul.f32 %v910_v25, %v894_v26 }
 0x23b   : > { %v915_v61 = vmul.f32 %v911_v28, %v276_v29 }
 0x23d   : > { %v920_v9 = vsel %vm919_vm10, %v915_v61, 0.0 }
 0x249   : > { %v897_v27 = vpop.xlane.xlu2 %896 }
 0x24a   : > { %v900_v32 = vpop.xlane.xlu0 %899  ;;  %v912_v60 = vmul.f32 %v910_v25, %v897_v27  ;;  %v1259_v27 = vld [vmem:[%s1947_s4 + $0x18] sm:$0xff] }
 0x24b   : > { %v913_v33 = vmul.f32 %v910_v25, %v900_v32 }
 0x24c   : > { %v916_v34 = vmul.f32 %v912_v60, %v277_v62 }
 0x24d   : > { %v917_v38 = vmul.f32 %v913_v33, %v278_v36  ;;  %v888_v36 = vld [vmem:[%s1948_s5] sm:$0xff] }
 0x24e   : > { %v921_v37 = vsel %vm919_vm10, %v916_v34, 0.0 }
 0x24f   : > { %v922_v39 = vadd.f32 %v921_v37, %v920_v9  ;;  %v923_v41 = vsel %vm919_vm10, %v917_v38, 0.0  ;;  %v889_v9 = vld [vmem:[%s1948_s5 + $0x8] sm:$0xff] }
 0x251   : > { %v903_v42 = vpop.xlane.xlu2 %902  ;;  %v924_v47 = vadd.f32 %v923_v41, %v922_v39 }
 0x252   : > { %v914_v43 = vmul.f32 %v910_v25, %v903_v42 }
 0x254   : > { %v918_v44 = vmul.f32 %v914_v43, %v279_v40  ;;  %v890_v43 = vld [vmem:[%s1948_s5 + $0x10] sm:$0xff] }
 0x256   : > { %v925_v52 = vsel %vm919_vm10, %v918_v44, 0.0  ;;  %v891_v44 = vld [vmem:[%s1948_s5 + $0x18] sm:$0xff] }
 0x257   : > { %v926_v12 = vadd.f32 %v925_v52, %v924_v47 }
 0x259   : > { %v927_v53 = vrot.slane %v926_v12, 4 }
 0x25b   : > { %v928_v11 = vadd.f32 %v927_v53, %v926_v12 }
 0x25d   : > { %v929_v54 = vrot.slane %v928_v11, 2 }
 0x25f   : > { %v930_v35 = vadd.f32 %v929_v54, %v928_v11  ;;  %v1377_v11 = vmov 3  }
 0x261   : > { %v931_v57 = vrot.slane %v930_v35, 1 }
 0x263   : > { %v932_v48 = vadd.f32 %v931_v57, %v930_v35 }
 0x265   : > { %v933_v58 = vadd.f32 %v932_v48, %v284_v51 }
 0x267   : > { %v934_v49 = vmax.f32 %v933_v58, 0.0 }
 0x269   : > { %v935_v46 = vperm.slane %v934_v49, 0  ;;  %v1260_v49 = vld [vmem:[%s1477_s20] sm:$0xff] }
 0x26b   : > { %v938_v63 = vmul.f32 %v935_v46, %v282_v45  ;;  %v937_v22 = vmul.f32 %v935_v46, %v281_v59  ;;  %v936_v0 = vmul.f32 %v935_v46, %v280_v50  ;;  %v939_v2 = vmul.f32 %v935_v46, %v283_v1  ;;  %v1261_v59 = vld [vmem:[%s1477_s20 + $0x8] sm:$0xff]  ;;  %v1263_v1 = vld [vmem:[%s1477_s20 + $0x18] sm:$0xff] }
 0x26d   : > { %v946_v23 = vsel %vm919_vm10, %v938_v63, 0.0  ;;  %v943_v56 = vsel %vm919_vm10, %v937_v22, 0.0  ;;  %v940_v55 = vsel %vm919_vm10, %v936_v0, 0.0  ;;  %v949_v3 = vsel %vm919_vm10, %v939_v2, 0.0 }
 0x26e   : > { %947 = vadd.xlane.f32.xlu0 %v946_v23  ;;  %944 = vadd.xlane.f32.xlu2 %v943_v56  ;;  %v1262_v56 = vld [vmem:[%s1477_s20 + $0x10] sm:$0xff] }
 0x26f   : > { %941 = vadd.xlane.f32.xlu1 %v940_v55 }
 0x277   : > { %950 = vadd.xlane.f32.xlu1 %v949_v3 }
 0x2e1   : > { %v948_v5 = vpop.xlane.xlu0 %947  ;;  %v945_v10 = vpop.xlane.xlu2 %944 }
 0x2e2   : > { %v954_v8 = vadd.f32 %v1256_v7, %v948_v5  ;;  %v953_v15 = vadd.f32 %v1257_v14, %v945_v10  ;;  %v942_v16 = vpop.xlane.xlu1 %941 }
 0x2e3   : > { %v952_v18 = vadd.f32 %v1258_v17, %v942_v16 }
 0x2e4   : > { %v958_v19 = vadd.f32 3.0, %v954_v8  ;;  %v957_v13 = vadd.f32 3.0, %v953_v15 }
 0x2e5   : > { %v956_v6 = vadd.f32 3.0, %v952_v18 }
 0x2e6   : > { %v962_v20 = vmax.f32 %v958_v19, 0.0  ;;  %v961_v30 = vmax.f32 %v957_v13, 0.0 }
 0x2e7   : > { %v960_v31 = vmax.f32 %v956_v6, 0.0 }
 0x2e8   : > { %v966_v21 = vmin.f32 %v962_v20, 6.0  ;;  %v965_v24 = vmin.f32 %v961_v30, 6.0 }
 0x2e9   : > { %v964_v25 = vmin.f32 %v960_v31, 6.0 }
 0x2ea   : > { %v970_v26 = vmul.f32 0.16666667, %v966_v21  ;;  %v969_v28 = vmul.f32 0.16666667, %v965_v24  ;;  %v951_v29 = vpop.xlane.xlu1 %950 }
 0x2eb   : > { %v968_v62 = vmul.f32 0.16666667, %v964_v25  ;;  %v955_v32 = vadd.f32 %v1259_v27, %v951_v29 }
 0x2ec   : > { %979 = vperm.xlu0 %1250, %v969_v28   ;;  %984 = vperm.xlu1 %1251, %v970_v26  }
 0x2ed   : > { %v959_v60 = vadd.f32 3.0, %v955_v32  ;;  %974 = vperm.xlu2 %1249, %v968_v62  }
 0x2ef   : > { %v963_v61 = vmax.f32 %v959_v60, 0.0 }
 0x2f1   : > { %v967_v33 = vmin.f32 %v963_v61, 6.0 }
 0x2f3   : > { %v971_v34 = vmul.f32 0.16666667, %v967_v33 }
 0x2f4   : > { %1253 = vset.pattern.permute.xlu0 %v1377_v11 }
 0x2f5   : > { %989 = vperm.xlu2 %1249, %v971_v34  }
 0x2fd   : > { %1252 = vset.pattern.permute.xlu2 %v1377_v11 }
 0x2fe   : > { %1003 = vperm.xlu2 %1252, %v1258_v17  }
 0x306   : > { %1007 = vperm.xlu2 %1252, %v1257_v14  }
 0x347   : > { %v975_v37 = vpop.permute.xlu2 %974 }
 0x348   : > { %v992_v39 = vmul.f32 %v975_v37, %v888_v36 }
 0x34f   : > { %v990_v47 = vpop.permute.xlu2 %989 }
 0x350   : > { %v995_v12 = vmul.f32 %v990_v47, %v891_v44 }
 0x358   : > { %v1004_v35 = vpop.permute.xlu2 %1003 }
 0x35e   : > { %v980_v38 = vpop.permute.xlu0 %979  ;;  %v985_v41 = vpop.permute.xlu1 %984 }
 0x35f   : > { %v993_v40 = vmul.f32 %v980_v38, %v889_v9  ;;  %v994_v52 = vmul.f32 %v985_v41, %v890_v43 }
 0x360   : > { %v1008_v46 = vpop.permute.xlu2 %1007 }
 0x361   : > { %v996_v42 = vpack.c.bf16 %v993_v40, %v992_v39  ;;  %v997_v53 = vpack.c.bf16 %v995_v12, %v994_v52 }
 0x363   : > { %1010 = vxpose.xlu1.c.b16.start [1/2] (short) (narrow) %v996_v42, 16 }
 0x373   : > { %1011 = vxpose.xlu1.c.b16.end [2/2] (short) (narrow) %v997_v53, 16 }
 0x40f   : > { %v1018_v54 = vpop.trf.xlu1 }
 0x410   : > { %1169 = vmatmul.msk.bf16.vlgmr.msra.gmra.mxu2 %vm1026_vm11, %v1018_v54  ;;  %1170 = vmatmul.msk.bf16.vlgmr.msra.gmra.mxu3 %vm1026_vm11, %v1018_v54 }
 0x493   : > { %v1039_v57 = vpop.f32.mrf.mxu2  ;;  %v1053_v51 = vpop.f32.mrf.mxu3 }
 0x494   : > { %v1040_v48 = vadd.f32 %v1039_v57, %v1004_v35  ;;  %v1054_v58 = vadd.f32 %v1053_v51, %v1004_v35 }
 0x496   : > { %v1058_v45 = vadd.f32 %v1260_v49, %v1040_v48  ;;  %v1059_v50 = vadd.f32 %v1261_v59, %v1054_v58 }
 0x498   : > { %1062 = vst [vmem:[%s261_s14] sm:$0xff] %v1058_v45 }
 0x499   : > { %1063 = vst [vmem:[%s261_s14 + $0x8] sm:$0xff] %v1059_v50 }
 0x49b   : > { %v1041_v63 = vpop.f32.mrf.mxu2  ;;  %v1055_v22 = vpop.f32.mrf.mxu3 }
 0x49c   : > { %v1042_v0 = vadd.f32 %v1041_v63, %v1008_v46  ;;  %v1056_v23 = vadd.f32 %v1055_v22, %v1008_v46 }
 0x49e   : > { %v1060_v55 = vadd.f32 %v1262_v56, %v1042_v0  ;;  %v1061_v2 = vadd.f32 %v1263_v1, %v1056_v23 }
 0x4a0   : > { %1064 = vst [vmem:[%s261_s14 + $0x10] sm:$0xff] %v1060_v55 }
 0x4a1   : > { %1065 = vst [vmem:[%s261_s14 + $0x18] sm:$0xff] %v1061_v2 }
 0x4a2   : > { %1321 = shalt.err (!%p1318_p8)
}
 0x4a3   : > { %s1378_s20 = smov 256  }
 0x4a4   : > { %1182 = dma.vmem_to_hbm [thread:$0]  (%p1452_p5), %s1080_s18, 512, %s1082_s19, %s1067_s25, %s1378_s20, %s1378_s20, %s1367_s9  }
 0x4a5 PF: > { %p1194_p9 = scmp.ge.s32.totalorder %s1360_s24, 2  ;;  %s1096_s11 = sand.u32 1, %s1348_s21  }
 0x4a6   : > { %s1097_s14 = scalar_lea.sflag [#allocation4], %s1096_s11 }
 0x4a7   : > { %p1189_p10 = pnand %p1194_p9, %p1456_p6 }
 0x4a9   : > { %p1190_p11 = pneg %p1189_p10 }
 0x4ab   : > { %1343 = dma.done.wait (%p1190_p11), %s1097_s14, 512  }
 0x4ac   : > { %1345 = vsyncadd (%p1190_p11), %s1097_s14, 4294966784  ;;  %p17_p12 = scmp.ge.s32.totalorder %s1439_s27, 4   ;;  %s1952_s21 = smov %s1352_s22 }
 0x4ad   : > { %s1953_s22 = smov %s1356_s23  ;;  %s1954_s23 = smov %s1450_s30 }
 0x4ae   : > { %s1955_s24 = smov %s1439_s27  ;;  %19 = sbr.rel (!%p17_p12) target bundleno = 4 (0x4), region = 92 }
 0x4b3   :  { %1103 = vsyncpa [#allocation3], 1 }
 0x4b4   :  { %1105 = vsyncpa [#allocation3 + $0x1], 1 }
 0x4b5   :  { %1106 = vsyncpa [#allocation4], 1 }
 0x4b6   :  { %1108 = vsyncpa [#allocation4 + $0x1], 1 }

</bundles_post_ra>
